<compile_context>
chip_gen: v7x
topology: tpu7x:2x2x1
jax: 0.10.0
libtpu: 0.0.40
codegen_flags: <defaults>
</compile_context>

<pallas_src>
import functools
import math

import jax
import jax.numpy as jnp
from jax.experimental import pallas as pl
from jax.experimental.pallas import tpu as pltpu

NEG_SLOPE = 0.2  # nn.LeakyReLU(0.2)
INV_SQRT2 = 1.0 / math.sqrt(2.0)


def _leaky(v):
    return jnp.where(v >= 0, v, NEG_SLOPE * v)


def _vmem_limit(nbytes):
    # generous margin, floored at 16 MiB, capped well under v7x's 64 MiB.
    return int(min(max(nbytes + (8 << 20), 16 << 20), 48 << 20))


# --------------------------- shared pool epilogue ----------------------------

def _pool_build_store(acc, bias, tq_ref, o_ref, *, wp, wp_out, h_out, w_out,
                      l_quad):
    """2x2 avg-pool (scale pre-folded into weights) + canonical padded store.

    acc: (m_flat, ct) f32, acc[r*wp + c] = conv value at full-res pixel (r, c).
    Builds the whole padded-flat output block as one value -> one aligned store.
    """
    ct = o_ref.shape[-1]
    quad = (acc[0:l_quad] + acc[1:1 + l_quad]
            + acc[wp:wp + l_quad] + acc[wp + 1:wp + 1 + l_quad])
    if bias is not None:
        quad = quad + bias
    tq_ref[...] = quad                                  # f32 scratch
    zedge = jnp.zeros((wp_out + 1, ct), jnp.float32)    # top/bottom pad rows
    zmid = jnp.zeros((2, ct), jnp.float32)              # inter-row pad columns
    pieces = [zedge]
    for r in range(h_out):                              # small static loop
        pieces.append(tq_ref[pl.ds(2 * r * wp, w_out, 2), :])
        pieces.append(zmid if r + 1 < h_out else zedge)
    full = jnp.concatenate(pieces, axis=0)              # (p_out, ct)
    o_ref[0] = full.astype(o_ref.dtype)


# ------------------------------- plain conv ----------------------------------

def _conv_kernel(*refs, k, wp, w_in, m_flat, pre_leaky, fuse_shortcut):
    """Fused 'same' conv (k=1 or 3) on one batch element / one Cout tile.

    Input canonical padded-flat (1, (H+2)*(W+2), Cin).  Tap (i, j) is a
    contiguous slab of the flat input; one big (M, Cin) x (Cin, Ct) MXU matmul
    per tap.  Optional fused pre-LeakyReLU and fused residual add.
    """
    x_ref, w_ref, b_ref = refs[0], refs[1], refs[2]
    nxt = 3
    s_ref = None
    if fuse_shortcut:
        s_ref = refs[nxt]
        nxt += 1
    o_ref = refs[nxt]
    nxt += 1
    xs_ref = refs[nxt] if pre_leaky else None

    if pre_leaky:
        # LeakyReLU applied ONCE per input tile, into scratch; taps read scratch.
        xs_ref[...] = _leaky(x_ref[0])

    def tap(off):
        if pre_leaky:
            return xs_ref[pl.ds(off, m_flat), :]
        return x_ref[0, pl.ds(off, m_flat), :]

    pad = (k - 1) // 2
    ct = o_ref.shape[-1]
    acc = jnp.zeros((m_flat, ct), jnp.float32)
    for i in range(k):
        for j in range(k):
            off = (i + 1 - pad) * wp + (j + 1 - pad)
            acc = acc + jnp.dot(tap(off), w_ref[i * k + j],
                                preferred_element_type=jnp.float32)

    val = acc + b_ref[...]
    if fuse_shortcut:
        s_slab = s_ref[0, pl.ds(wp + 1, m_flat), :].astype(jnp.float32)
        val = (val + s_slab) * INV_SQRT2

    # zero the columns that become the next layer's padding (in-kernel iota mask)
    col = jax.lax.broadcasted_iota(jnp.int32, (m_flat, 1), 0) % wp
    val = jnp.where(col < w_in, val, 0.0)

    # one full-block, aligned store: [zero pad rows | interior slab | zero pad]
    zedge = jnp.zeros((wp + 1, ct), jnp.float32)
    full = jnp.concatenate([zedge, val, zedge], axis=0)
    o_ref[0] = full.astype(o_ref.dtype)


def conv_layer(x, w, b, *, k, h_in, w_in, pre_leaky=False, shortcut=None):
    """'same' conv on canonical padded-flat activations.

    x: (N, (h+2)*(w+2), Cin);  w: (k*k, Cin, Cout);  b: (Cout,) f32
    shortcut: optional canonical (N, p_out, Cout) -> fuses (s + conv)/sqrt(2).
    """
    n, p_in, cin = x.shape
    cout = w.shape[-1]
    wp = w_in + 2
    assert p_in == (h_in + 2) * wp
    p_out = p_in
    m_flat = (h_in - 1) * wp + w_in

    # Cout tile: 256-wide for big channel counts (v6e/v7x MXU), else whole.
    if cout <= 256:
        ct = cout
    elif cout % 256 == 0:
        ct = 256
    elif cout % 128 == 0:
        ct = 128
    else:
        ct = cout
    n_ct = cout // ct

    kernel = functools.partial(
        _conv_kernel, k=k, wp=wp, w_in=w_in, m_flat=m_flat,
        pre_leaky=pre_leaky, fuse_shortcut=shortcut is not None)

    in_specs = [
        pl.BlockSpec((1, p_in, cin), lambda j, bb: (bb, 0, 0)),
        pl.BlockSpec((k * k, cin, ct), lambda j, bb: (0, 0, j)),
        pl.BlockSpec((1, ct), lambda j, bb: (0, j)),
    ]
    args = [x, w, b.reshape(1, cout).astype(jnp.float32)]
    if shortcut is not None:
        args.append(shortcut)
        in_specs.append(pl.BlockSpec((1, p_out, ct), lambda j, bb: (bb, 0, j)))

    scratch = []
    it = jnp.dtype(x.dtype).itemsize
    scratch_bytes = 0
    if pre_leaky:
        scratch.append(pltpu.VMEM((p_in, cin), x.dtype))
        scratch_bytes = p_in * cin * it

    blk = (p_in * cin + p_out * ct) * it + k * k * cin * ct * it + ct * 4
    if shortcut is not None:
        blk += p_out * ct * it

    return pl.pallas_call(
        kernel,
        out_shape=jax.ShapeDtypeStruct((n, p_out, cout), x.dtype),
        grid=(n_ct, n),                         # batch innermost: weights resident
        in_specs=in_specs,
        out_specs=pl.BlockSpec((1, p_out, ct), lambda j, bb: (bb, 0, j)),
        scratch_shapes=scratch,
        compiler_params=pltpu.CompilerParams(
            dimension_semantics=("parallel", "parallel"),
            vmem_limit_bytes=_vmem_limit(2 * blk + scratch_bytes)),
    )(*args)


# -------------------- fused ResBlk downsample stage-1 ------------------------

def _resblk_pool_kernel(*refs, wp, m_flat, h_out, w_out, wp_out, l_quad,
                        learned_sc):
    """One kernel, two outputs, one read of x:
         r = avg_pool2(conv1(leaky(x)))            (pool 1/4 folded into w1)
         s = avg_pool2(conv1x1(x))   or   avg_pool2(x)
    """
    if learned_sc:
        (x_ref, w1_ref, b1_ref, wsc_ref,
         r_ref, s_ref, xs_ref, tq_r, tq_s) = refs
    else:
        (x_ref, w1_ref, b1_ref,
         r_ref, s_ref, xs_ref, tq_r, tq_s) = refs
        wsc_ref = None

    cin = x_ref.shape[-1]

    # ---- residual branch: LeakyReLU once, 9 taps, fused pool ----
    xs_ref[...] = _leaky(x_ref[0])
    acc_r = jnp.zeros((m_flat, cin), jnp.float32)
    for i in range(3):
        for j in range(3):
            off = i * wp + j
            acc_r = acc_r + jnp.dot(xs_ref[pl.ds(off, m_flat), :],
                                    w1_ref[i * 3 + j],
                                    preferred_element_type=jnp.float32)
    _pool_build_store(acc_r, b1_ref[...], tq_r, r_ref, wp=wp, wp_out=wp_out,
                      h_out=h_out, w_out=w_out, l_quad=l_quad)

    # ---- shortcut branch on the RAW (pre-activation) input ----
    x_slab = x_ref[0, pl.ds(wp + 1, m_flat), :]
    if learned_sc:
        acc_s = jnp.dot(x_slab, wsc_ref[...],
                        preferred_element_type=jnp.float32)  # 0.25 in weights
    else:
        acc_s = x_slab.astype(jnp.float32) * 0.25
    _pool_build_store(acc_s, None, tq_s, s_ref, wp=wp, wp_out=wp_out,
                      h_out=h_out, w_out=w_out, l_quad=l_quad)


def resblk_pool_stage(x, w1, b1, wsc, *, h_in, w_in):
    """x: (N, p_in, Cin); w1: (9, Cin, Cin) pre-scaled by 0.25; b1: (Cin,) f32;
    wsc: None (identity shortcut) or (Cin, Cout) pre-scaled by 0.25.
    Returns (r, s) in canonical padded-flat layout at the pooled resolution."""
    n, p_in, cin = x.shape
    cout = cin if wsc is None else wsc.shape[-1]
    wp = w_in + 2
    assert p_in == (h_in + 2) * wp
    h_out, w_out = h_in // 2, w_in // 2
    wp_out = w_out + 2
    p_out = (h_out + 2) * wp_out
    m_flat = (h_in - 1) * wp + w_in
    l_quad = (h_in - 2) * wp + w_in - 1

    kernel = functools.partial(
        _resblk_pool_kernel, wp=wp, m_flat=m_flat, h_out=h_out, w_out=w_out,
        wp_out=wp_out, l_quad=l_quad, learned_sc=wsc is not None)

    in_specs = [
        pl.BlockSpec((1, p_in, cin), lambda bb: (bb, 0, 0)),
        pl.BlockSpec((9, cin, cin), lambda bb: (0, 0, 0)),
        pl.BlockSpec((1, cin), lambda bb: (0, 0)),
    ]
    args = [x, w1, b1.reshape(1, cin).astype(jnp.float32)]
    if wsc is not None:
        args.append(wsc)
        in_specs.append(pl.BlockSpec((cin, cout), lambda bb: (0, 0)))

    it = jnp.dtype(x.dtype).itemsize
    blk = (p_in * cin + p_out * (cin + cout)) * it + 9 * cin * cin * it + cin * 4
    if wsc is not None:
        blk += cin * cout * it
    scratch_bytes = p_in * cin * it + l_quad * (cin + cout) * 4

    out_shape = (jax.ShapeDtypeStruct((n, p_out, cin), x.dtype),
                 jax.ShapeDtypeStruct((n, p_out, cout), x.dtype))
    out_specs = (pl.BlockSpec((1, p_out, cin), lambda bb: (bb, 0, 0)),
                 pl.BlockSpec((1, p_out, cout), lambda bb: (bb, 0, 0)))

    return pl.pallas_call(
        kernel,
        out_shape=out_shape,
        grid=(n,),
        in_specs=in_specs,
        out_specs=out_specs,
        scratch_shapes=[pltpu.VMEM((p_in, cin), x.dtype),
                        pltpu.VMEM((l_quad, cin), jnp.float32),
                        pltpu.VMEM((l_quad, cout), jnp.float32)],
        compiler_params=pltpu.CompilerParams(
            dimension_semantics=("parallel",),
            vmem_limit_bytes=_vmem_limit(2 * blk + scratch_bytes)),
    )(*args)


# --------------------------------- head --------------------------------------

def _head_kernel(x_ref, w4_ref, b4_ref, wo_ref, bo_ref, o_ref, *, wp, c):
    """Whole batch in one step: LeakyReLU -> 4x4 valid conv as ONE
    (N, 16C) x (16C, C) matmul -> LeakyReLU -> 1x1 conv."""
    # input is (N, P*C): the 4 taps of kernel row i are 4*C contiguous lanes.
    rows = [x_ref[:, pl.ds(((1 + i) * wp + 1) * c, 4 * c)] for i in range(4)]
    xcat = jnp.concatenate(rows, axis=-1)                  # (N, 16*C)
    xcat = _leaky(xcat)
    h = jnp.dot(xcat, w4_ref[...], preferred_element_type=jnp.float32)
    h = _leaky(h + b4_ref[...])
    out = jnp.dot(h.astype(wo_ref.dtype), wo_ref[...],
                  preferred_element_type=jnp.float32) + bo_ref[...]
    o_ref[...] = out.astype(o_ref.dtype)


def head(hc, w4, b4, wo, bo, *, h_in, w_in):
    """hc: canonical (N, 36, C) with 4x4 interior; w4: (16*C, C); wo: (C, D)."""
    assert h_in == 4 and w_in == 4
    n, p, c = hc.shape
    d = wo.shape[-1]
    wp = w_in + 2
    hc2 = hc.reshape(n, p * c)        # lane-flatten (free layout plumbing)

    it = jnp.dtype(hc.dtype).itemsize
    blk = n * p * c * it + 16 * c * c * it + c * d * it + (c + d) * 4 + n * d * 4

    kernel = functools.partial(_head_kernel, wp=wp, c=c)
    return pl.pallas_call(
        kernel,
        out_shape=jax.ShapeDtypeStruct((n, d), jnp.float32),
        grid=(1,),
        in_specs=[
            pl.BlockSpec((n, p * c), lambda i: (0, 0)),
            pl.BlockSpec((16 * c, c), lambda i: (0, 0)),
            pl.BlockSpec((1, c), lambda i: (0, 0)),
            pl.BlockSpec((c, d), lambda i: (0, 0)),
            pl.BlockSpec((1, d), lambda i: (0, 0)),
        ],
        out_specs=pl.BlockSpec((n, d), lambda i: (0, 0)),
        compiler_params=pltpu.CompilerParams(
            dimension_semantics=("arbitrary",),
            vmem_limit_bytes=_vmem_limit(2 * blk)),
    )(hc2, w4, b4.reshape(1, c).astype(jnp.float32), wo,
      bo.reshape(1, d).astype(jnp.float32))


# ------------------------------ parameter init -------------------------------

def _conv_params(key, kh, kw, cin, cout, bias=True):
    wk, bk = jax.random.split(key)
    scale = 1.0 / math.sqrt(cin * kh * kw)
    w = jax.random.normal(wk, (kh * kw, cin, cout), jnp.float32) * scale
    if bias:
        b = jax.random.normal(bk, (cout,), jnp.float32) * scale
    else:
        b = jnp.zeros((cout,), jnp.float32)   # conv1x1 shortcut has bias=False
    return w, b


def init_params(key, img_size, num_domains, max_conv_dim, base_dim=None):
    dim_in = (2 ** 14) // img_size if base_dim is None else base_dim
    repeat_num = int(math.log2(img_size)) - 2
    keys = iter(jax.random.split(key, 4 + 3 * repeat_num))

    params = {"conv0": _conv_params(next(keys), 3, 3, 3, dim_in)}
    blocks = []
    for _ in range(repeat_num):
        dim_out = min(dim_in * 2, max_conv_dim)
        blk = {
            "learned_sc": dim_in != dim_out,
            "conv1": _conv_params(next(keys), 3, 3, dim_in, dim_in),
            "conv2": _conv_params(next(keys), 3, 3, dim_in, dim_out),
        }
        if blk["learned_sc"]:
            blk["conv1x1"] = _conv_params(next(keys), 1, 1, dim_in, dim_out,
                                          bias=False)
        blocks.append(blk)
        dim_in = dim_out
    params["blocks"] = blocks
    params["conv_k4"] = _conv_params(next(keys), 4, 4, dim_in, dim_in)
    params["conv_out"] = _conv_params(next(keys), 1, 1, dim_in, num_domains)
    return params


# ------------------------------ forward passes --------------------------------

def discriminator_forward(params, x, y, dtype=jnp.bfloat16):
    """x: (N, H, W, 3) f32 NHWC, y: (N,) int32 domain indices -> (N,) f32."""
    n, h_img, w_img, _ = x.shape

    # conv0 lifted to an im2col 1x1 conv: K = 9*3 = 27 feeds the MXU far better
    # than nine K=3 taps.  One-time, tiny wrapper-level prep on the 3ch input.
    xp = jnp.pad(x, ((0, 0), (1, 1), (1, 1), (0, 0)))
    patches = [xp[:, i:i + h_img, j:j + w_img, :]
               for i in range(3) for j in range(3)]
    x9 = jnp.concatenate(patches, axis=-1)                      # (N, H, W, 27)
    xc = jnp.pad(x9, ((0, 0), (1, 1), (1, 1), (0, 0)))
    xc = xc.reshape(n, (h_img + 2) * (w_img + 2), 27).astype(dtype)

    w0, b0 = params["conv0"]
    w0 = w0.reshape(1, 27, w0.shape[-1]).astype(dtype)
    hcur = conv_layer(xc, w0, b0, k=1, h_in=h_img, w_in=w_img)
    hs, ws = h_img, w_img

    for blk in params["blocks"]:
        # stage 1: [leaky + conv1 + pool] and [shortcut (+ 1x1) + pool] fused,
        # one HBM read of hcur, two outputs.  Pool scale 1/4 folded into weights.
        wc1, bc1 = blk["conv1"]
        wc1 = (wc1 * 0.25).astype(dtype)
        wsc = None
        if blk["learned_sc"]:
            wsc = (blk["conv1x1"][0][0] * 0.25).astype(dtype)   # (Cin, Cout)
        r, s = resblk_pool_stage(hcur, wc1, bc1, wsc, h_in=hs, w_in=ws)
        hs, ws = hs // 2, ws // 2
        # stage 2: [leaky + conv2 + (s + r)/sqrt(2)] fused.
        wc2, bc2 = blk["conv2"]
        hcur = conv_layer(r, wc2.astype(dtype), bc2, k=3, h_in=hs, w_in=ws,
                          pre_leaky=True, shortcut=s)

    w4, b4 = params["conv_k4"]
    wo, bo = params["conv_out"]
    c = w4.shape[1]
    logits = head(hcur, w4.reshape(16 * c, c).astype(dtype), b4,
                  wo[0].astype(dtype), bo, h_in=hs, w_in=ws)     # (N, D)
    # TODO(synk): per-sample label gather kept as plain-JAX glue (trivial indexing)
    return jnp.take_along_axis(logits, y[:, None].astype(jnp.int32), axis=1)[:, 0]


# --- pure-JAX reference (for correctness check only) ---

def _conv_ref(x, w, b, kh, kw, pad, pre_leaky=False):
    if pre_leaky:
        x = _leaky(x)
    cin, cout = w.shape[1], w.shape[2]
    y = jax.lax.conv_general_dilated(
        x, w.reshape(kh, kw, cin, cout), window_strides=(1, 1),
        padding=((pad, pad), (pad, pad)),
        dimension_numbers=("NHWC", "HWIO", "NHWC"),
        precision=jax.lax.Precision.HIGHEST)
    return y + b.reshape(1, 1, 1, cout)


def _avgpool_ref(x):
    n, h, w, c = x.shape
    return x.reshape(n, h // 2, 2, w // 2, 2, c).mean(axis=(2, 4))


def discriminator_forward_ref(params, x, y):
    w, b = params["conv0"]
    h = _conv_ref(x, w, b, 3, 3, 1)
    for blk in params["blocks"]:
        if blk["learned_sc"]:
            w1, b1 = blk["conv1x1"]
            s = _conv_ref(h, w1, b1, 1, 1, 0)
        else:
            s = h
        s = _avgpool_ref(s)
        w1, b1 = blk["conv1"]
        r = _conv_ref(h, w1, b1, 3, 3, 1, pre_leaky=True)
        r = _avgpool_ref(r)
        w2, b2 = blk["conv2"]
        r = _conv_ref(r, w2, b2, 3, 3, 1, pre_leaky=True)
        h = (s + r) / math.sqrt(2.0)
    w4, b4 = params["conv_k4"]
    h = _conv_ref(h, w4, b4, 4, 4, 0, pre_leaky=True)
    wo, bo = params["conv_out"]
    h = _conv_ref(h, wo, bo, 1, 1, 0, pre_leaky=True)
    logits = h.reshape(h.shape[0], -1)
    return jnp.take_along_axis(logits, y[:, None].astype(jnp.int32), axis=1)[:, 0]


# ----------------------------------- main -------------------------------------

if __name__ == "__main__":
    img_size = 16          # -> repeat_num = 2 ResBlks, final spatial 4x4
    num_domains = 2
    max_conv_dim = 64
    base_dim = 16          # module default would be 2**14 // img_size; shrunk

    root = jax.random.PRNGKey(0)
    kp, kx, ky = jax.random.split(root, 3)
    params = init_params(kp, img_size, num_domains, max_conv_dim, base_dim)

    batch = 2
    x = jax.random.normal(kx, (batch, img_size, img_size, 3), jnp.float32)  # NHWC
    y = jax.random.randint(ky, (batch,), 0, num_domains, dtype=jnp.int32)

    ref = jax.block_until_ready(discriminator_forward_ref(params, x, y))

    # f32 run: tight correctness gate.
    out_f32 = jax.block_until_ready(
        discriminator_forward(params, x, y, dtype=jnp.float32))
    assert out_f32.shape == (batch,)
    if not jnp.allclose(out_f32, ref, atol=2e-3, rtol=2e-3):
        raise AssertionError(f"f32 mismatch: pallas={out_f32} ref={ref}")

    # bf16 run (production config per perf feedback): relaxed tolerance.
    out_bf16 = jax.block_until_ready(
        discriminator_forward(params, x, y, dtype=jnp.bfloat16))
    assert out_bf16.shape == (batch,)
    if not jnp.allclose(out_bf16, ref, atol=1e-1, rtol=1e-1):
        raise AssertionError(f"bf16 mismatch: pallas={out_bf16} ref={ref}")

    print("KERNEL_OK")
</pallas_src>

<mosaic_0001>
module attributes {stable_mosaic.version = 11 : i64} {
  func.func @_conv_kernel(%arg0: i32, %arg1: i32, %arg2: memref<1x324x27xf32, #tpu.memory_space<vmem>>, %arg3: memref<1x27x16xf32, #tpu.memory_space<vmem>>, %arg4: memref<1x16xf32, #tpu.memory_space<vmem>>, %arg5: memref<1x324x16xf32, #tpu.memory_space<vmem>>) attributes {dimension_semantics = [#tpu.dimension_semantics<parallel>, #tpu.dimension_semantics<parallel>], iteration_bounds = array<i64: 1, 2>, scalar_prefetch = 0 : i64, scratch_operands = 0 : i64, tpu.core_type = #tpu.core_type<tc>, window_params = [{transform_indices = @transform_0, window_bounds = array<i64: 1, 324, 27>}, {transform_indices = @transform_1, window_bounds = array<i64: 1, 27, 16>}, {transform_indices = @transform_2, window_bounds = array<i64: 1, 16>}, {transform_indices = @transform_3, window_bounds = array<i64: 1, 324, 16>}]} {
    %cst = arith.constant 0.000000e+00 : f32
    %0 = vector.broadcast %cst : f32 to vector<286x16xf32>
    %c0 = arith.constant 0 : index
    %c19 = arith.constant 19 : index
    %c0_0 = arith.constant 0 : index
    %1 = vector.load %arg2[%c0, %c19, %c0_0] : memref<1x324x27xf32, #tpu.memory_space<vmem>>, vector<1x286x27xf32>
    %2 = vector.shape_cast %1 : vector<1x286x27xf32> to vector<286x27xf32>
    %c0_1 = arith.constant 0 : index
    %c0_2 = arith.constant 0 : index
    %c0_3 = arith.constant 0 : index
    %3 = vector.load %arg3[%c0_1, %c0_2, %c0_3] : memref<1x27x16xf32, #tpu.memory_space<vmem>>, vector<1x27x16xf32>
    %4 = vector.shape_cast %3 : vector<1x27x16xf32> to vector<27x16xf32>
    %cst_4 = arith.constant dense<0.000000e+00> : vector<286x16xf32>
    %5 = tpu.matmul %2, %4, %cst_4 {dimension_numbers = #tpu.dot_dimension_numbers<[1], [0], [0], [1], [0, 0, 1, 1], [], []>} : vector<286x27xf32>, vector<27x16xf32>, vector<286x16xf32> -> vector<286x16xf32>
    %6 = arith.addf %0, %5 : vector<286x16xf32>
    %c0_5 = arith.constant 0 : index
    %c0_6 = arith.constant 0 : index
    %7 = vector.load %arg4[%c0_5, %c0_6] : memref<1x16xf32, #tpu.memory_space<vmem>>, vector<1x16xf32>
    %8 = vector.broadcast %7 : vector<1x16xf32> to vector<286x16xf32>
    %9 = arith.addf %6, %8 : vector<286x16xf32>
    %10 = tpu.iota {dimensions = array<i32: 0>} : vector<286x1xi32>
    %c18_i32 = arith.constant 18 : i32
    %c0_i32 = arith.constant 0 : i32
    %11 = arith.cmpi eq, %c18_i32, %c0_i32 : i32
    %c1_i32 = arith.constant 1 : i32
    %12 = arith.select %11, %c1_i32, %c18_i32 : i32
    %13 = vector.broadcast %12 : i32 to vector<286x1xi32>
    %14 = arith.remsi %10, %13 : vector<286x1xi32>
    %c0_i32_7 = arith.constant 0 : i32
    %15 = vector.broadcast %c0_i32_7 : i32 to vector<286x1xi32>
    %16 = arith.cmpi ne, %14, %15 : vector<286x1xi32>
    %c0_i32_8 = arith.constant 0 : i32
    %17 = vector.broadcast %c0_i32_8 : i32 to vector<286x1xi32>
    %18 = arith.cmpi slt, %14, %17 : vector<286x1xi32>
    %c0_i32_9 = arith.constant 0 : i32
    %19 = arith.cmpi slt, %12, %c0_i32_9 : i32
    %20 = vector.broadcast %19 : i1 to vector<286x1xi1>
    %21 = vector.broadcast %20 : vector<286x1xi1> to vector<286x1xi1>
    %22 = arith.xori %18, %21 : vector<286x1xi1>
    %23 = arith.andi %22, %16 : vector<286x1xi1>
    %24 = vector.broadcast %12 : i32 to vector<286x1xi32>
    %25 = arith.addi %14, %24 : vector<286x1xi32>
    %26 = arith.select %23, %25, %14 : vector<286x1xi1>, vector<286x1xi32>
    %c16_i32 = arith.constant 16 : i32
    %27 = vector.broadcast %c16_i32 : i32 to vector<286x1xi32>
    %28 = arith.cmpi slt, %26, %27 : vector<286x1xi32>
    %cst_10 = arith.constant 0.000000e+00 : f32
    %29 = vector.shape_cast %28 : vector<286x1xi1> to vector<286x1xi1>
    %30 = vector.broadcast %29 : vector<286x1xi1> to vector<286x16xi1>
    %31 = vector.broadcast %cst_10 : f32 to vector<286x16xf32>
    %32 = arith.select %30, %9, %31 : vector<286x16xi1>, vector<286x16xf32>
    %cst_11 = arith.constant 0.000000e+00 : f32
    %33 = vector.broadcast %cst_11 : f32 to vector<19x16xf32>
    %34 = tpu.concatenate %33, %32, %33 in 0 : vector<19x16xf32>, vector<286x16xf32>, vector<19x16xf32> -> vector<324x16xf32>
    %c0_12 = arith.constant 0 : index
    %c0_13 = arith.constant 0 : index
    %c0_14 = arith.constant 0 : index
    %35 = vector.load %arg5[%c0_12, %c0_13, %c0_14] : memref<1x324x16xf32, #tpu.memory_space<vmem>>, vector<1x324x16xf32>
    %36 = vector.shape_cast %35 : vector<1x324x16xf32> to vector<324x16xf32>
    %37 = vector.shape_cast %34 : vector<324x16xf32> to vector<1x324x16xf32>
    tpu.vector_store %arg5[%c0_12, %c0_13, %c0_14], %37 {strides = array<i32>} : memref<1x324x16xf32, #tpu.memory_space<vmem>>, vector<1x324x16xf32>,
    return
  }
  func.func @transform_0(%arg0: i32, %arg1: i32) -> (i32, i32, i32) {
    %c0_i32 = arith.constant 0 : i32
    %c0_i32_0 = arith.constant 0 : i32
    %c0_i32_1 = arith.constant 0 : i32
    return %arg1, %c0_i32, %c0_i32_0 : i32, i32, i32
  }
  func.func @transform_1(%arg0: i32, %arg1: i32) -> (i32, i32, i32) {
    %c0_i32 = arith.constant 0 : i32
    %c0_i32_0 = arith.constant 0 : i32
    %c0_i32_1 = arith.constant 0 : i32
    return %c0_i32, %c0_i32_0, %arg0 : i32, i32, i32
  }
  func.func @transform_2(%arg0: i32, %arg1: i32) -> (i32, i32) {
    %c0_i32 = arith.constant 0 : i32
    %c0_i32_0 = arith.constant 0 : i32
    return %c0_i32, %arg0 : i32, i32
  }
  func.func @transform_3(%arg0: i32, %arg1: i32) -> (i32, i32, i32) {
    %c0_i32 = arith.constant 0 : i32
    %c0_i32_0 = arith.constant 0 : i32
    return %arg1, %c0_i32, %arg0 : i32, i32, i32
  }
}

</mosaic_0001>

<bundles_post_ra>
// kernel: tpu_custom_call.1
= control target key start
LH: loop header
LB: loop body
LE: loop exit
PB: predicated region body
PF: predicated region fallthrough
CT: control target
= control target key end

     0   :  { %s1989_s12 = smov 0   ;;  %s1991_s13 = smov 0   ;;  %s3620_s0 = inlined_call_operand.vmem [shape: f32[2,324,27], index: 0, kind: input, shape index: {}]   ;;  %s3621_s1 = inlined_call_operand.vmem [shape: f32[1,27,16], index: 1, kind: input, shape index: {}]   ;;  %s3622_s2 = inlined_call_operand.vmem [shape: f32[1,16], index: 2, kind: input, shape index: {}]   ;;  %s3623_s3 = inlined_call_operand.vmem [shape: f32[2,324,16], index: 3, kind: output, shape index: {}]  }
   0x1   :  { %s1993_s14 = smov 0  }
   0x2 LB: > { %s22_s15 = sadd.s32 1, %s1961_s13  ;;  %p1685_p0 = scmp.ge.s32.totalorder %s1965_s14, 1  ;;  %s1965_s14 = sphi %s1993_s14, %s13_s14   ;;  %s1961_s13 = sphi %s1991_s13, %s4154_s13   ;;  %s1957_s12 = sphi %s1989_s12, %s4153_s12  }
   0x3   : > { %p23_p1 = scmp.ge.s32.totalorder %s22_s15, 2  ;;  %p168_p2 = scmp.lt.s32.totalorder %s1965_s14, 3 }
   0x5   : > { %s4156_s15 = smov (%p23_p1, %s22_s15), 0  ;;  %p169_p3 = pnand %p1685_p0, %p168_p2 }
   0x7   : > { %172 = sbr.rel (%p169_p3) target bundleno = 319 (0x13f), region = 32 }
   0xe   : > { %v258_v0 = vld [vmem:[%s3621_s1] sm:$0xff]  ;;  %v259_v1 = vld [vmem:[%s3621_s1 + $0x8] sm:$0xff]  ;;  %v260_v2 = vld [vmem:[%s3621_s1 + $0x10] sm:$0xff]  ;;  %vm3625_vm0 = vcmask 1042432   ;;  %p202_p4 = scmp.lt.s32.totalorder %s1957_s12, 1  ;;  %vm1967_vm1 = vmmov 1   ;;  %v627_v42 = vlaneseq }
   0xf   : > { %v1830_v3 = vpack.c.bf16 %v259_v1, %v258_v0  ;;  %v261_v4 = vld [vmem:[%s3621_s1 + $0x18] sm:$0x7]  ;;  %vm1835_vm2 = vmpackc.low %vm3625_vm0, %vm1967_vm1  ;;  %vm269_vm3 = vcmask 220160   ;;  %vm3624_vm1 = vcmask 130048  }
  0x10   : > { %v1834_v5 = vpack.c.bf16 %v261_v4, %v260_v2  ;;  %s4158_s12 = smov (!%p202_p4, %s1957_s12), 1  ;;  %v2102_v43 = vshrl.u32 %v627_v42, 7 }
  0x11   : > { %1831 = vmatprep.subr.bf16.mxu0 %v1830_v3  ;;  %1840 = vmatprep.subr.bf16.mxu1 %v1830_v3  ;;  %s1844_s24 = smul.u32 328, %s4158_s12 }
  0x12   : > { %1833 = vmatpush3.bf16.msra.mxu0 %v1830_v3  ;;  %1842 = vmatpush3.bf16.msra.mxu1 %v1830_v3  ;;  %v629_v44 = vadd.s32 8, %v2102_v43  ;;  %v647_v45 = vadd.s32 152, %v2102_v43  ;;  %v646_v48 = vadd.s32 144, %v2102_v43  ;;  %v631_v55 = vadd.s32 24, %v2102_v43 }
  0x13   : > { %1836 = vmatprep.subr.msk.bf16.mxu0 %vm1835_vm2, %v1834_v5  ;;  %1841 = vmatprep.subr.msk.bf16.mxu1 %vm1835_vm2, %v1834_v5  ;;  %s2028_s27 = scalar_lea.vmem %s3620_s0, %s1844_s24  ;;  %v2114_v51 = vmul.u32.u64.low 3817748708, %v2102_v43  ;;  %v2115_v52 = vmul.u32.u64.high 3817748708, %v2102_v43, %v2114_v51  ;;  %v649_v56 = vadd.s32 168, %v2102_v43  ;;  %v2133_v3 = vadd.s32 16, %v2102_v43  ;;  %s2239_s30 = scalar_lea.vmem %s3623_s3, %s1844_s24 }
  0x14   : > { %v222_v6 = vld [vmem:[%s2028_s27 + $0x13] sm:$0xff]  ;;  %v240_v7 = vld [vmem:[%s2028_s27 + $0xa3] sm:$0xff]  ;;  %v223_v8 = vld [vmem:[%s2028_s27 + $0x1b] sm:$0xff]  ;;  %v2106_v46 = vmul.u32.u64.low 3817748708, %v629_v44  ;;  %v2107_v47 = vmul.u32.u64.high 3817748708, %v629_v44, %v2106_v46  ;;  %v3718_v51 = vmov 0 }
  0x15   : > { %v241_v9 = vld [vmem:[%s2028_s27 + $0xab] sm:$0xff]  ;;  %1776 = vmatprep.mubr.msk.f32.mxu0 %vm269_vm3, %v222_v6  ;;  %1803 = vmatprep.mubr.msk.f32.mxu1 %vm269_vm3, %v240_v7  ;;  %v224_v10 = vld [vmem:[%s2028_s27 + $0x23] sm:$0xff]  ;;  %v242_v11 = vld [vmem:[%s2028_s27 + $0xb3] sm:$0xff]  ;;  %v2110_v49 = vmul.u32.u64.low 3817748708, %v647_v45  ;;  %v2111_v50 = vmul.u32.u64.high 3817748708, %v647_v45, %v2110_v49  ;;  %v670_v0 = vshrl.u32 %v2115_v52, 4 }
  0x16   : > { %1839 = vmatpush3.bf16.msk.msra.mxu0 %vm1835_vm2, %v1834_v5  ;;  %1843 = vmatpush3.bf16.msk.msra.mxu1 %vm1835_vm2, %v1834_v5  ;;  %v225_v12 = vld [vmem:[%s2028_s27 + $0x2b] sm:$0xff]  ;;  %v243_v13 = vld [vmem:[%s2028_s27 + $0xbb] sm:$0xff]  ;;  %v226_v14 = vld [vmem:[%s2028_s27 + $0x33] sm:$0xff]  ;;  %v2117_v53 = vmul.u32.u64.low 3817748708, %v646_v48  ;;  %v2118_v54 = vmul.u32.u64.high 3817748708, %v646_v48, %v2117_v53  ;;  %v681_v57 = vshrl.u32 %v2107_v47, 4 }
  0x17   : > { %v244_v15 = vld [vmem:[%s2028_s27 + $0xc3] sm:$0xff]  ;;  %v227_v16 = vld [vmem:[%s2028_s27 + $0x3b] sm:$0xff]  ;;  %v245_v17 = vld [vmem:[%s2028_s27 + $0xcb] sm:$0xff]  ;;  %v2123_v58 = vmul.u32.u64.low 3817748708, %v631_v55  ;;  %v2124_v59 = vmul.u32.u64.high 3817748708, %v631_v55, %v2123_v58  ;;  %v879_v60 = vshrl.u32 %v2111_v50, 4 }
  0x18   : > { %v228_v18 = vld [vmem:[%s2028_s27 + $0x43] sm:$0xff]  ;;  %v246_v19 = vld [vmem:[%s2028_s27 + $0xd3] sm:$0xff]  ;;  %v229_v20 = vld [vmem:[%s2028_s27 + $0x4b] sm:$0xff]  ;;  %v2127_v61 = vmul.u32.u64.low 3817748708, %v649_v56  ;;  %v2128_v62 = vmul.u32.u64.high 3817748708, %v649_v56, %v2127_v61  ;;  %v682_v63 = vmul.u32 18, %v681_v57 }
  0x19   : > { %1777 = vmatmul.mubr.msk.f32.vlgmr.msra.gmra.mrb[0].mxu0 %vm269_vm3, %v223_v8  ;;  %1804 = vmatmul.mubr.msk.f32.vlgmr.msra.gmra.mrb[0].mxu1 %vm269_vm3, %v241_v9  ;;  %v247_v21 = vld [vmem:[%s2028_s27 + $0xdb] sm:$0xff]  ;;  %v230_v22 = vld [vmem:[%s2028_s27 + $0x53] sm:$0xff]  ;;  %v248_v23 = vld [vmem:[%s2028_s27 + $0xe3] sm:$0xff]  ;;  %v868_v1 = vshrl.u32 %v2118_v54, 4  ;;  %v880_v2 = vmul.u32 18, %v879_v60  ;;  %v2138_v5 = vadd.s32 160, %v2102_v43 }
  0x1a   : > { %1779 = vmatprep.mubr.msk.f32.mxu0 %vm269_vm3, %v224_v10  ;;  %1806 = vmatprep.mubr.msk.f32.mxu1 %vm269_vm3, %v242_v11  ;;  %v231_v24 = vld [vmem:[%s2028_s27 + $0x5b] sm:$0xff]  ;;  %v249_v25 = vld [vmem:[%s2028_s27 + $0xeb] sm:$0xff]  ;;  %v232_v26 = vld [vmem:[%s2028_s27 + $0x63] sm:$0xff]  ;;  %v2135_v4 = vsub.s32 %v629_v44, %v682_v63  ;;  %v671_v6 = vmul.u32 18, %v670_v0  ;;  %v703_v8 = vshrl.u32 %v2124_v59, 4  ;;  %v901_v10 = vshrl.u32 %v2128_v62, 4 }
  0x1b   : > { %v250_v27 = vld [vmem:[%s2028_s27 + $0xf3] sm:$0xff]  ;;  %v233_v28 = vld [vmem:[%s2028_s27 + $0x6b] sm:$0xff]  ;;  %v251_v29 = vld [vmem:[%s2028_s27 + $0xfb] sm:$0xff]  ;;  %v869_v7 = vmul.u32 18, %v868_v1  ;;  %v2141_v9 = vsub.s32 %v647_v45, %v880_v2  ;;  %v2232_v45 = vadd.s32 48, %v2102_v43  ;;  %v2247_v49 = vadd.s32 192, %v2102_v43 }
  0x1c   : > { %v234_v30 = vld [vmem:[%s2028_s27 + $0x73] sm:$0xff]  ;;  %v252_v31 = vld [vmem:[%s2028_s27 + $0x103] sm:$0xff]  ;;  %v235_v32 = vld [vmem:[%s2028_s27 + $0x7b] sm:$0xff]  ;;  %vm1061_vm4 = vcmp.ne.s32.totalorder %v2135_v4, 0  ;;  %vm1097_vm5 = vcmp.lt.s32.totalorder %v2135_v4, 0  ;;  %v1968_v50 = vmov 0.0  }
  0x1d   : > { %1780 = vmatmul.mubr.msk.f32.gmra.mrb[2].mxu0 %vm269_vm3, %v225_v12  ;;  %1807 = vmatmul.mubr.msk.f32.gmra.mrb[2].mxu1 %vm269_vm3, %v243_v13  ;;  %v253_v33 = vld [vmem:[%s2028_s27 + $0x10b] sm:$0xff]  ;;  %v236_v34 = vld [vmem:[%s2028_s27 + $0x83] sm:$0xff]  ;;  %v254_v35 = vld [vmem:[%s2028_s27 + $0x113] sm:$0xff]  ;;  %v2145_v11 = vmul.u32.u64.low 3817748708, %v2133_v3  ;;  %v2146_v12 = vmul.u32.u64.high 3817748708, %v2133_v3, %v2145_v11  ;;  %vm1079_vm7 = vcmp.ne.s32.totalorder %v2141_v9, 0 }
  0x1e   : > { %1782 = vmatprep.mubr.msk.f32.mxu0 %vm269_vm3, %v226_v14  ;;  %1809 = vmatprep.mubr.msk.f32.mxu1 %vm269_vm3, %v244_v15  ;;  %v237_v36 = vld [vmem:[%s2028_s27 + $0x8b] sm:$0xff]  ;;  %v255_v37 = vld [vmem:[%s2028_s27 + $0x11b] sm:$0xff]  ;;  %v238_v38 = vld [vmem:[%s2028_s27 + $0x93] sm:$0xff]  ;;  %v2151_v13 = vmul.u32.u64.low 3817748708, %v2138_v5  ;;  %v2152_v14 = vmul.u32.u64.high 3817748708, %v2138_v5, %v2151_v13  ;;  %v2155_v15 = vadd.s32 18, %v2135_v4 }
  0x1f   : > { %v256_v39 = vld [vmem:[%s2028_s27 + $0x123] sm:$0xff]  ;;  %v239_v40 = vld [vmem:[%s2028_s27 + $0x9b] sm:$0xff]  ;;  %v257_v41 = vld [vmem:[%s2028_s27 + $0x12b] sm:$0x3f]  ;;  %vm1115_vm8 = vcmp.lt.s32.totalorder %v2141_v9, 0  ;;  %1532 = vst.msk [vmem:[%s2239_s30] sm:$0xff] %vm3624_vm1, %v1968_v50 }
  0x20   : > { %vm2160_vm6 = vmand %vm1097_vm5, %vm1061_vm4  ;;  %1533 = vst.msk [vmem:[%s2239_s30 + $0x8] sm:$0xff] %vm3624_vm1, %v1968_v50  ;;  %v2269_v54 = vadd.s32 72, %v2102_v43  ;;  %v2295_v62 = vmul.u32.u64.low 3817748708, %v2232_v45  ;;  %v2296_v63 = vmul.u32.u64.high 3817748708, %v2232_v45, %v2295_v62  ;;  %v3724_v1 = vmov 0 }
  0x21   : > { %1783 = vmatmul.mubr.msk.f32.gmra.mrb[4].mxu0 %vm269_vm3, %v227_v16  ;;  %1810 = vmatmul.mubr.msk.f32.gmra.mrb[4].mxu1 %vm269_vm3, %v245_v17  ;;  %v2158_v16 = vsub.s32 %v2102_v43, %v671_v6  ;;  %v704_v17 = vmul.u32 18, %v703_v8  ;;  %vm2187_vm9 = vmand %vm1115_vm8, %vm1079_vm7  ;;  %1571 = vst.msk [vmem:[%s2239_s30 + $0x138] sm:$0xff] %vm3624_vm1, %v1968_v50  ;;  %v3776_v6 = vmov 0 }
  0x22   : > { %1785 = vmatprep.mubr.msk.f32.mxu0 %vm269_vm3, %v228_v18  ;;  %1812 = vmatprep.mubr.msk.f32.mxu1 %vm269_vm3, %v246_v19  ;;  %v2167_v19 = vadd.s32 40, %v2102_v43  ;;  %v3833_v18 = vmov 0 }
  0x23   : > { %vm1060_vm10 = vcmp.ne.s32.totalorder %v2158_v16, 0  ;;  %vm1096_vm11 = vcmp.lt.s32.totalorder %v2158_v16, 0 }
  0x24   : > { %vm2259_vm4 = vmand %vm1096_vm11, %vm1060_vm10 }
  0x25   : > { %1786 = vmatmul.mubr.msk.f32.gmra.mrb[6].mxu0 %vm269_vm3, %v229_v20  ;;  %1813 = vmatmul.mubr.msk.f32.gmra.mrb[6].mxu1 %vm269_vm3, %v247_v21  ;;  %v2169_v20 = vsub.s32 %v646_v48, %v869_v7  ;;  %v902_v21 = vmul.u32 18, %v901_v10  ;;  %v3719_v51 = vsel %vm2259_vm4, 4294967295, %v3718_v51  ;;  %v3726_v7 = vmov 0 }
  0x26   : > { %1788 = vmatprep.mubr.msk.f32.mxu0 %vm269_vm3, %v230_v22  ;;  %1815 = vmatprep.mubr.msk.f32.mxu1 %vm269_vm3, %v248_v23  ;;  %v2172_v22 = vadd.s32 18, %v2141_v9  ;;  %v2175_v23 = vadd.s32 184, %v2102_v43  ;;  %v2331_v10 = vmul.u32.u64.low 3817748708, %v2269_v54  ;;  %v2332_v11 = vmul.u32.u64.high 3817748708, %v2269_v54, %v2331_v10 }
  0x27   : > { %vm1078_vm12 = vcmp.ne.s32.totalorder %v2169_v20, 0  ;;  %vm1114_vm13 = vcmp.lt.s32.totalorder %v2169_v20, 0 }
  0x28   : > { %vm2276_vm7 = vmand %vm1114_vm13, %vm1078_vm12 }
  0x29   : > { %1789 = vmatmul.mubr.msk.f32.gmra.mrb[8].mxu0 %vm269_vm3, %v231_v24  ;;  %1816 = vmatmul.mubr.msk.f32.gmra.mrb[8].mxu1 %vm269_vm3, %v249_v25  ;;  %v2178_v24 = vadd.s32 32, %v2102_v43  ;;  %v2181_v25 = vadd.s32 176, %v2102_v43 }
  0x2a   : > { %1791 = vmatprep.mubr.msk.f32.mxu0 %vm269_vm3, %v232_v26  ;;  %1818 = vmatprep.mubr.msk.f32.mxu1 %vm269_vm3, %v250_v27 }
  0x2b   : > { %v2228_v42 = vmul.u32.u64.low 3817748708, %v2178_v24  ;;  %v2229_v44 = vmul.u32.u64.high 3817748708, %v2178_v24, %v2228_v42  ;;  %v2243_v47 = vmul.u32.u64.low 3817748708, %v2181_v25  ;;  %v2244_v48 = vmul.u32.u64.high 3817748708, %v2181_v25, %v2243_v47 }
  0x2c   : > { %v2368_v42 = vadd.s32 208, %v2102_v43 }
  0x2d   : > { %1792 = vmatmul.mubr.msk.f32.gmra.mrb[10].mxu0 %vm269_vm3, %v233_v28  ;;  %1819 = vmatmul.mubr.msk.f32.gmra.mrb[10].mxu1 %vm269_vm3, %v251_v29  ;;  %v2193_v28 = vsub.s32 %v631_v55, %v704_v17  ;;  %v2196_v29 = vadd.s32 18, %v2158_v16  ;;  %v3720_v55 = vmov 0  ;;  %v714_v13 = vshrl.u32 %v2229_v44, 4 }
  0x2e   : > { %1794 = vmatprep.mubr.msk.f32.mxu0 %vm269_vm3, %v234_v30  ;;  %1821 = vmatprep.mubr.msk.f32.mxu1 %vm269_vm3, %v252_v31  ;;  %v692_v30 = vshrl.u32 %v2146_v12, 4  ;;  %v3721_v55 = vsel %vm2276_vm7, 4294967295, %v3720_v55  ;;  %v2344_v17 = vadd.s32 216, %v2102_v43  ;;  %v3731_v44 = vmov 0 }
  0x2f   : > { %vm1063_vm14 = vcmp.ne.s32.totalorder %v2193_v28, 0  ;;  %vm1099_vm15 = vcmp.lt.s32.totalorder %v2193_v28, 0  ;;  %v2289_v60 = vadd.s32 18, %v2193_v28  ;;  %v715_v47 = vmul.u32 18, %v714_v13 }
  0x30   : > { %vm2306_vm8 = vmand %vm1099_vm15, %vm1063_vm14 }
  0x31   : > { %1795 = vmatmul.mubr.msk.f32.gmra.mrb[12].mxu0 %vm269_vm3, %v235_v32  ;;  %1822 = vmatmul.mubr.msk.f32.gmra.mrb[12].mxu1 %vm269_vm3, %v253_v33  ;;  %v2200_v31 = vmul.u32.u64.low 3817748708, %v2167_v19  ;;  %v2201_v32 = vmul.u32.u64.high 3817748708, %v2167_v19, %v2200_v31  ;;  %v2205_v33 = vsub.s32 %v649_v56, %v902_v21  ;;  %v3725_v1 = vsel %vm2306_vm8, 4294967295, %v3724_v1 }
  0x32   : > { %1797 = vmatprep.mubr.msk.f32.mxu0 %vm269_vm3, %v236_v34  ;;  %1824 = vmatprep.mubr.msk.f32.mxu1 %vm269_vm3, %v254_v35  ;;  %v890_v34 = vshrl.u32 %v2152_v14, 4  ;;  %v912_v31 = vshrl.u32 %v2244_v48, 4  ;;  %v3767_v21 = vmov 0  ;;  %v2540_v35 = vadd.s32 104, %v2102_v43 }
  0x33   : > { %vm1081_vm2 = vcmp.ne.s32.totalorder %v2205_v33, 0  ;;  %vm1117_vm5 = vcmp.lt.s32.totalorder %v2205_v33, 0  ;;  %v725_v57 = vshrl.u32 %v2201_v32, 4  ;;  %v2311_v2 = vadd.s32 18, %v2205_v33 }
  0x34   : > { %v891_v46 = vmul.u32 18, %v890_v34  ;;  %vm2325_vm10 = vmand %vm1117_vm5, %vm1081_vm2  ;;  %v2355_v32 = vadd.s32 64, %v2102_v43  ;;  %v3728_v34 = vmov 0  ;;  %v913_v62 = vmul.u32 18, %v912_v31 }
  0x35   : > { %1798 = vmatmul.mubr.msk.f32.gmra.mrb[14].mxu0 %vm269_vm3, %v237_v36  ;;  %1825 = vmatmul.mubr.msk.f32.gmra.mrb[14].mxu1 %vm269_vm3, %v255_v37  ;;  %v2213_v36 = vadd.s32 18, %v2169_v20  ;;  %v2216_v37 = vadd.s32 56, %v2102_v43  ;;  %v3727_v7 = vsel %vm2325_vm10, 4294967295, %v3726_v7  ;;  %v726_v12 = vmul.u32 18, %v725_v57 }
  0x36   : > { %1800 = vmatprep.mubr.msk.f32.mxu0 %vm269_vm3, %v238_v38  ;;  %1827 = vmatprep.mubr.msk.f32.mxu1 %vm269_vm3, %v256_v39  ;;  %v2219_v38 = vadd.s32 200, %v2102_v43  ;;  %v2292_v61 = vsub.s32 %v2138_v5, %v891_v46 }
  0x37   : > { %v2265_v52 = vmul.u32.u64.low 3817748708, %v2216_v37  ;;  %v2266_v53 = vmul.u32.u64.high 3817748708, %v2216_v37, %v2265_v52  ;;  %v2377_v46 = vsub.s32 %v2167_v19, %v726_v12  ;;  %v769_v12 = vshrl.u32 %v2332_v11, 4 }
  0x38   : > { %v2285_v58 = vmul.u32.u64.low 3817748708, %v2219_v38  ;;  %v2286_v59 = vmul.u32.u64.high 3817748708, %v2219_v38, %v2285_v58  ;;  %3723 = vst [vmem:[#allocation3_spill] sm:$0xff] %v2292_v61  ;;  %vm1080_vm13 = vcmp.ne.s32.totalorder %v2292_v61, 0  ;;  %vm1116_vm14 = vcmp.lt.s32.totalorder %v2292_v61, 0 }
  0x39   : > { %1801 = vmatmul.mubr.msk.f32.gmra.mrb[16].mxu0 %vm269_vm3, %v239_v40  ;;  %1828 = vmatmul.mubr.msk.f32.gmra.mrb[16].mxu1 %vm269_vm3, %v257_v41  ;;  %v2224_v39 = vmul.u32.u64.low 3817748708, %v2175_v23  ;;  %v2225_v40 = vmul.u32.u64.high 3817748708, %v2175_v23, %v2224_v39  ;;  %v693_v41 = vmul.u32 18, %v692_v30  ;;  %vm1572_vm3 = vcmask 125952   ;;  %vm2372_vm2 = vmand %vm1116_vm14, %vm1080_vm13  ;;  %3734 = vst [vmem:[#allocation6_spill] sm:$0xff] %v2377_v46 }
  0x3a   : > { %1573 = vst.msk [vmem:[%s2239_s30 + $0x140] sm:$0xf] %vm1572_vm3, %v1968_v50  ;;  %v2364_v39 = vadd.s32 18, %v2292_v61  ;;  %v3732_v44 = vsel %vm2372_vm2, 4294967295, %v3731_v44  ;;  %v945_v48 = vshrl.u32 %v2286_v59, 4  ;;  %v2381_v50 = vadd.s32 88, %v2102_v43 }
  0x3b   : > { %v2281_v56 = vsub.s32 %v2133_v3, %v693_v41  ;;  %v2314_v3 = vmul.u32.u64.low 3817748708, %v2247_v49  ;;  %v2315_v5 = vmul.u32.u64.high 3817748708, %v2247_v49, %v2314_v3  ;;  %v923_v8 = vshrl.u32 %v2225_v40, 4  ;;  %3733 = vst [vmem:[#allocation5_spill] sm:$0xff] %v3732_v44 }
  0x3c   : > { %3730 = vst [vmem:[#allocation4_spill] sm:$0xff] %v2364_v39  ;;  %v747_v41 = vshrl.u32 %v2266_v53, 4  ;;  %v736_v52 = vshrl.u32 %v2296_v63, 4  ;;  %v2385_v53 = vmul.u32.u64.low 3817748708, %v2344_v17  ;;  %v2386_v57 = vmul.u32.u64.high 3817748708, %v2344_v17, %v2385_v53 }
  0x3d   : > { %3722 = vst [vmem:[#allocation2_spill] sm:$0xff] %v2281_v56  ;;  %vm1062_vm11 = vcmp.ne.s32.totalorder %v2281_v56, 0  ;;  %vm1098_vm12 = vcmp.lt.s32.totalorder %v2281_v56, 0  ;;  %v2351_v30 = vadd.s32 18, %v2281_v56  ;;  %v924_v40 = vmul.u32 18, %v923_v8 }
  0x3e   : > { %vm2359_vm15 = vmand %vm1098_vm12, %vm1062_vm11  ;;  %v2389_v58 = vadd.s32 232, %v2102_v43  ;;  %v934_v59 = vshrl.u32 %v2315_v5, 4  ;;  %v2397_v3 = vadd.s32 80, %v2102_v43  ;;  %v748_v10 = vmul.u32 18, %v747_v41 }
  0x3f   : > { %v3729_v34 = vsel %vm2359_vm15, 4294967295, %v3728_v34  ;;  %v2404_v8 = vsub.s32 %v2175_v23, %v924_v40  ;;  %vm1065_vm3 = vcmp.ne.s32.totalorder %v2377_v46, 0  ;;  %vm1101_vm5 = vcmp.lt.s32.totalorder %v2377_v46, 0 }
  0x40   : > { %v2410_v5 = vsub.s32 %v2178_v24, %v715_v47  ;;  %v946_v13 = vmul.u32 18, %v945_v48  ;;  %v2413_v31 = vadd.s32 18, %v2377_v46  ;;  %v737_v53 = vmul.u32 18, %v736_v52  ;;  %vm2426_vm11 = vmand %vm1101_vm5, %vm1065_vm3 }
  0x41   : > { %3735 = vst [vmem:[#allocation7_spill] sm:$0xff] %v2404_v8  ;;  %v2416_v63 = vmul.u32.u64.low 3817748708, %v2355_v32  ;;  %v2417_v19 = vmul.u32.u64.high 3817748708, %v2355_v32, %v2416_v63  ;;  %v2420_v23 = vsub.s32 %v2181_v25, %v913_v62  ;;  %v935_v11 = vmul.u32 18, %v934_v59 }
  0x42   : > { %3736 = vst [vmem:[#allocation8_spill] sm:$0xff] %v2410_v5  ;;  %3737 = vst [vmem:[#allocation9_spill] sm:$0xff] %v2413_v31  ;;  %v2423_v40 = vmul.u32.u64.low 3817748708, %v2368_v42  ;;  %v2424_v41 = vmul.u32.u64.high 3817748708, %v2368_v42, %v2423_v40  ;;  %v3739_v24 = vmov 0  ;;  %vm1083_vm12 = vcmp.ne.s32.totalorder %v2404_v8, 0 }
  0x43   : > { %3738 = vst [vmem:[#allocation10_spill] sm:$0xff] %v2420_v23  ;;  %v3740_v24 = vsel %vm2426_vm11, 4294967295, %v3739_v24  ;;  %vm1119_vm13 = vcmp.lt.s32.totalorder %v2404_v8, 0  ;;  %v2433_v47 = vsub.s32 %v2216_v37, %v748_v10  ;;  %v770_v48 = vmul.u32 18, %v769_v12 }
  0x44   : > { %3741 = vst [vmem:[#allocation11_spill] sm:$0xff] %v3740_v24  ;;  %v2436_v25 = vadd.s32 18, %v2404_v8  ;;  %v2441_v52 = vsub.s32 %v2219_v38, %v946_v13  ;;  %v2444_v62 = vsub.s32 %v2232_v45, %v737_v53  ;;  %v967_v59 = vshrl.u32 %v2386_v57, 4  ;;  %vm2464_vm0 = vmand %vm1119_vm13, %vm1083_vm12 }
  0x45   : > { %3742 = vst [vmem:[#allocation12_spill] sm:$0xff] %v2433_v47  ;;  %v2448_v63 = vmul.u32.u64.low 3817748708, %v2381_v50  ;;  %v2449_v37 = vmul.u32.u64.high 3817748708, %v2381_v50, %v2448_v63  ;;  %vm1118_vm5 = vcmp.lt.s32.totalorder %v2420_v23, 0  ;;  %v2458_v38 = vsub.s32 %v2247_v49, %v935_v11 }
  0x46   : > { %3743 = vst [vmem:[#allocation13_spill] sm:$0xff] %v2436_v25  ;;  %3744 = vst [vmem:[#allocation14_spill] sm:$0xff] %v2441_v52  ;;  %v3747_v45 = vmov 0  ;;  %vm1103_vm14 = vcmp.lt.s32.totalorder %v2433_v47, 0  ;;  %v2471_v57 = vsub.s32 %v2269_v54, %v770_v48  ;;  %v2474_v12 = vadd.s32 224, %v2102_v43 }
  0x47   : > { %3745 = vst [vmem:[#allocation15_spill] sm:$0xff] %v2444_v62  ;;  %3746 = vst [vmem:[#allocation16_spill] sm:$0xff] %v2458_v38  ;;  %v3748_v45 = vsel %vm2464_vm0, 4294967295, %v3747_v45  ;;  %vm3751_vm3 = vcmp.ne.s32.totalorder %v2410_v5, 0  ;;  %vm3752_vm11 = vcmp.lt.s32.totalorder %v2410_v5, 0  ;;  %v3753_v49 = vmov 0 }
  0x48   : > { %3749 = vst [vmem:[#allocation17_spill] sm:$0xff] %v3748_v45  ;;  %3750 = vst [vmem:[#allocation18_spill] sm:$0xff] %v2471_v57  ;;  %v2485_v13 = vadd.s32 18, %v2410_v5  ;;  %v2488_v53 = vadd.s32 18, %v2420_v23  ;;  %vm1085_vm12 = vcmp.ne.s32.totalorder %v2441_v52, 0  ;;  %vm1121_vm13 = vcmp.lt.s32.totalorder %v2441_v52, 0 }
  0x49   : > { %vm2480_vm2 = vmand %vm3752_vm11, %vm3751_vm3  ;;  %vm3758_vm1 = vcmp.ne.s32.totalorder %v2420_v23, 0  ;;  %v3759_v54 = vmov 0  ;;  %v2499_v11 = vadd.s32 18, %v2433_v47  ;;  %vm1102_vm3 = vcmp.lt.s32.totalorder %v2444_v62, 0 }
  0x4a   : > { %v3754_v49 = vsel %vm2480_vm2, 4294967295, %v3753_v49  ;;  %3756 = vst [vmem:[#allocation20_spill] sm:$0xff] %v2485_v13  ;;  %3757 = vst [vmem:[#allocation21_spill] sm:$0xff] %v2488_v53  ;;  %v968_v40 = vmul.u32 18, %v967_v59  ;;  %vm3763_vm10 = vcmp.ne.s32.totalorder %v2433_v47, 0  ;;  %v3764_v48 = vmov 0 }
  0x4b   : > { %3755 = vst [vmem:[#allocation19_spill] sm:$0xff] %v3754_v49  ;;  %vm2494_vm15 = vmand %vm1118_vm5, %vm3758_vm1  ;;  %vm1084_vm7 = vcmp.ne.s32.totalorder %v2458_v38, 0  ;;  %vm1120_vm1 = vcmp.lt.s32.totalorder %v2458_v38, 0  ;;  %v758_v63 = vshrl.u32 %v2417_v19, 4  ;;  %v956_v10 = vshrl.u32 %v2424_v41, 4 }
  0x4c   : > { %v3760_v54 = vsel %vm2494_vm15, 4294967295, %v3759_v54  ;;  %3762 = vst [vmem:[#allocation23_spill] sm:$0xff] %v2499_v11  ;;  %vm2505_vm8 = vmand %vm1103_vm14, %vm3763_vm10  ;;  %vm1069_vm11 = vcmp.ne.s32.totalorder %v2471_v57, 0  ;;  %vm1105_vm4 = vcmp.lt.s32.totalorder %v2471_v57, 0  ;;  %v2528_v19 = vadd.s32 18, %v2441_v52 }
  0x4d   : > { %3761 = vst [vmem:[#allocation22_spill] sm:$0xff] %v3760_v54  ;;  %v3765_v48 = vsel %vm2505_vm8, 4294967295, %v3764_v48  ;;  %vm2513_vm5 = vmand %vm1121_vm13, %vm1085_vm12  ;;  %v2520_v59 = vmul.u32.u64.low 3817748708, %v2389_v58  ;;  %v2521_v14 = vmul.u32.u64.high 3817748708, %v2389_v58, %v2520_v59  ;;  %vm3771_vm10 = vcmp.ne.s32.totalorder %v2444_v62, 0 }
  0x4e   : > { %3766 = vst [vmem:[#allocation24_spill] sm:$0xff] %v3765_v48  ;;  %v3768_v21 = vsel %vm2513_vm5, 4294967295, %v3767_v21  ;;  %3770 = vst [vmem:[#allocation26_spill] sm:$0xff] %v2528_v19  ;;  %v3772_v41 = vmov 0  ;;  %v2537_v0 = vadd.s32 18, %v2444_v62  ;;  %v2551_v26 = vadd.s32 18, %v2458_v38 }
  0x4f   : > { %3769 = vst [vmem:[#allocation25_spill] sm:$0xff] %v3768_v21  ;;  %vm2532_vm14 = vmand %vm1102_vm3, %vm3771_vm10  ;;  %v2554_v8 = vadd.s32 18, %v2471_v57  ;;  %v791_v25 = vshrl.u32 %v2449_v37, 4  ;;  %v3781_v49 = vmov 0  ;;  %v759_v59 = vmul.u32 18, %v758_v63 }
  0x50   : > { %v3773_v41 = vsel %vm2532_vm14, 4294967295, %v3772_v41  ;;  %3775 = vst [vmem:[#allocation28_spill] sm:$0xff] %v2537_v0  ;;  %vm2546_vm12 = vmand %vm1120_vm1, %vm1084_vm7  ;;  %v957_v5 = vmul.u32 18, %v956_v10  ;;  %v2566_v13 = vadd.s32 248, %v2102_v43  ;;  %v2573_v37 = vsub.s32 %v2344_v17, %v968_v40 }
  0x51   : > { %3774 = vst [vmem:[#allocation27_spill] sm:$0xff] %v3773_v41  ;;  %v3777_v6 = vsel %vm2546_vm12, 4294967295, %v3776_v6  ;;  %3779 = vst [vmem:[#allocation30_spill] sm:$0xff] %v2551_v26  ;;  %v2576_v54 = vadd.s32 96, %v2102_v43  ;;  %v2579_v45 = vadd.s32 240, %v2102_v43  ;;  %v2590_v46 = vadd.s32 120, %v2102_v43 }
  0x52   : > { %3778 = vst [vmem:[#allocation29_spill] sm:$0xff] %v3777_v6  ;;  %3780 = vst [vmem:[#allocation31_spill] sm:$0xff] %v2554_v8  ;;  %v2593_v17 = vadd.s32 264, %v2102_v43  ;;  %v792_v52 = vmul.u32 18, %v791_v25  ;;  %v2604_v41 = vadd.s32 112, %v2102_v43  ;;  %v2607_v63 = vsub.s32 %v2355_v32, %v759_v59 }
  0x53   : > { %vm2561_vm13 = vmand %vm1105_vm4, %vm1069_vm11  ;;  %3784 = vst [vmem:[#allocation33_spill] sm:$0xff] %v2573_v37  ;;  %v2610_v62 = vsub.s32 %v2368_v42, %v957_v5  ;;  %v2613_v0 = vmul.u32.u64.low 3817748708, %v2397_v3  ;;  %v2614_v19 = vmul.u32.u64.high 3817748708, %v2397_v3, %v2613_v0  ;;  %vm1087_vm4 = vcmp.ne.s32.totalorder %v2573_v37, 0 }
  0x54   : > { %v3782_v49 = vsel %vm2561_vm13, 4294967295, %v3781_v49  ;;  %v989_v40 = vshrl.u32 %v2521_v14, 4  ;;  %v2619_v10 = vmul.u32.u64.low 3817748708, %v2474_v12  ;;  %v2620_v25 = vmul.u32.u64.high 3817748708, %v2474_v12, %v2619_v10 }
  0x55   : > { %3783 = vst [vmem:[#allocation32_spill] sm:$0xff] %v3782_v49  ;;  %3785 = vst [vmem:[#allocation34_spill] sm:$0xff] %v2610_v62  ;;  %v2623_v57 = vmul.u32.u64.low 3817748708, %v2540_v35  ;;  %v2624_v8 = vmul.u32.u64.high 3817748708, %v2540_v35, %v2623_v57  ;;  %v2627_v32 = vmul.u32.u64.low 3817748708, %v2566_v13  ;;  %v2628_v42 = vmul.u32.u64.high 3817748708, %v2566_v13, %v2627_v32 }
  0x56   : > { %vm1123_vm7 = vcmp.lt.s32.totalorder %v2573_v37, 0  ;;  %v2632_v0 = vadd.s32 18, %v2573_v37  ;;  %v2635_v5 = vsub.s32 %v2381_v50, %v792_v52  ;;  %v2638_v14 = vadd.s32 256, %v2102_v43 }
  0x57   : > { %vm1068_vm11 = vcmp.ne.s32.totalorder %v2607_v63, 0  ;;  %v2643_v57 = vadd.s32 18, %v2607_v63  ;;  %v2648_v59 = vadd.s32 18, %v2610_v62  ;;  %v990_v10 = vmul.u32 18, %v989_v40  ;;  %vm2673_vm10 = vmand %vm1123_vm7, %vm1087_vm4 }
  0x58   : > { %3786 = vst [vmem:[#allocation35_spill] sm:$0xff] %v2632_v0  ;;  %3787 = vst [vmem:[#allocation36_spill] sm:$0xff] %v2635_v5  ;;  %v2651_v50 = vmul.u32.u64.low 3817748708, %v2576_v54  ;;  %v2652_v52 = vmul.u32.u64.high 3817748708, %v2576_v54, %v2651_v50  ;;  %v2655_v32 = vmul.u32.u64.low 3817748708, %v2579_v45  ;;  %v2656_v49 = vmul.u32.u64.high 3817748708, %v2579_v45, %v2655_v32 }
  0x59   : > { %v2659_v38 = vadd.s32 136, %v2102_v43  ;;  %v2663_v26 = vmul.u32.u64.low 3817748708, %v2590_v46  ;;  %v2664_v6 = vmul.u32.u64.high 3817748708, %v2590_v46, %v2663_v26  ;;  %v2667_v21 = vadd.s32 280, %v2102_v43 }
  0x5a   : > { %v3788_v40 = vmov 0  ;;  %vm1107_vm1 = vcmp.lt.s32.totalorder %v2635_v5, 0  ;;  %v780_v50 = vshrl.u32 %v2614_v19, 4  ;;  %vm3791_vm3 = vcmp.lt.s32.totalorder %v2607_v63, 0 }
  0x5b   : > { %v3789_v40 = vsel %vm2673_vm10, 4294967295, %v3788_v40  ;;  %v2680_v32 = vmul.u32.u64.low 3817748708, %v2593_v17  ;;  %v2681_v47 = vmul.u32.u64.high 3817748708, %v2593_v17, %v2680_v32  ;;  %vm2687_vm13 = vmand %vm3791_vm3, %vm1068_vm11  ;;  %v3792_v26 = vmov 0 }
  0x5c   : > { %3790 = vst [vmem:[#allocation37_spill] sm:$0xff] %v3789_v40  ;;  %v3793_v26 = vsel %vm2687_vm13, 4294967295, %v3792_v26  ;;  %v2692_v11 = vadd.s32 18, %v2635_v5  ;;  %v978_v48 = vshrl.u32 %v2620_v25, 4  ;;  %vm3795_vm4 = vcmp.ne.s32.totalorder %v2610_v62, 0 }
  0x5d   : > { %v2696_v23 = vmul.u32.u64.low 3817748708, %v2604_v41  ;;  %v2697_v19 = vmul.u32.u64.high 3817748708, %v2604_v41, %v2696_v23  ;;  %vm3796_vm7 = vcmp.lt.s32.totalorder %v2610_v62, 0  ;;  %v3797_v32 = vmov 0 }
  0x5e   : > { %3794 = vst [vmem:[#allocation38_spill] sm:$0xff] %v2692_v11  ;;  %vm2703_vm12 = vmand %vm3796_vm7, %vm3795_vm4  ;;  %v813_v53 = vshrl.u32 %v2624_v8, 4  ;;  %v1011_v31 = vshrl.u32 %v2628_v42, 4  ;;  %v2710_v24 = vmul.u32.u64.low 3817748708, %v2638_v14  ;;  %v2711_v61 = vmul.u32.u64.high 3817748708, %v2638_v14, %v2710_v24 }
  0x5f   : > { %v3798_v32 = vsel %vm2703_vm12, 4294967295, %v3797_v32  ;;  %vm3799_vm11 = vcmp.ne.s32.totalorder %v2635_v5, 0  ;;  %v3800_v25 = vmov 0  ;;  %v2724_v39 = vsub.s32 %v2389_v58, %v990_v10 }
  0x60   : > { %vm2719_vm3 = vmand %vm1107_vm1, %vm3799_vm11  ;;  %v2727_v8 = vmul.u32.u64.low 3817748708, %v2659_v38  ;;  %v2728_v42 = vmul.u32.u64.high 3817748708, %v2659_v38, %v2727_v8  ;;  %v781_v44 = vmul.u32 18, %v780_v50  ;;  %v2735_v23 = vadd.s32 128, %v2102_v43 }
  0x61   : > { %v3801_v25 = vsel %vm2719_vm3, 4294967295, %v3800_v25  ;;  %v2731_v24 = vmul.u32.u64.low 3817748708, %v2667_v21  ;;  %v2732_v56 = vmul.u32.u64.high 3817748708, %v2667_v21, %v2731_v24  ;;  %v979_v10 = vmul.u32 18, %v978_v48 }
  0x62   : > { %3802 = vst [vmem:[#allocation39_spill] sm:$0xff] %v3801_v25  ;;  %v802_v50 = vshrl.u32 %v2652_v52, 4  ;;  %v814_v24 = vmul.u32 18, %v813_v53  ;;  %v1012_v0 = vmul.u32 18, %v1011_v31  ;;  %v1000_v40 = vshrl.u32 %v2656_v49, 4 }
  0x63   : > { %v835_v37 = vshrl.u32 %v2664_v6, 4  ;;  %v2755_v58 = vadd.s32 272, %v2102_v43  ;;  %v2758_v48 = vsub.s32 %v2397_v3, %v781_v44  ;;  %v1033_v52 = vshrl.u32 %v2681_v47, 4 }
  0x64   : > { %v2762_v8 = vmul.u32.u64.low 3817748708, %v2735_v23  ;;  %v2763_v53 = vmul.u32.u64.high 3817748708, %v2735_v23, %v2762_v8  ;;  %v2766_v31 = vadd.s32 18, %v2724_v39  ;;  %v2769_v49 = vsub.s32 %v2474_v12, %v979_v10 }
  0x65   : > { %v803_v5 = vmul.u32 18, %v802_v50  ;;  %v824_v6 = vshrl.u32 %v2697_v19, 4  ;;  %v2773_v43 = vsub.s32 %v2540_v35, %v814_v24  ;;  %v2776_v44 = vsub.s32 %v2566_v13, %v1012_v0 }
  0x66   : > { %v1001_v3 = vmul.u32 18, %v1000_v40  ;;  %v1022_v47 = vshrl.u32 %v2711_v61, 4  ;;  %v836_v11 = vmul.u32 18, %v835_v37  ;;  %v857_v8 = vshrl.u32 %v2728_v42, 4 }
  0x67   : > { %v2781_v25 = vmul.u32.u64.low 3817748708, %v2755_v58  ;;  %v2782_v62 = vmul.u32.u64.high 3817748708, %v2755_v58, %v2781_v25  ;;  %v1034_v12 = vmul.u32 18, %v1033_v52  ;;  %v1055_v35 = vshrl.u32 %v2732_v56, 4 }
  0x68   : > { %v2788_v13 = vadd.s32 18, %v2758_v48  ;;  %v2792_v61 = vsub.s32 %v2576_v54, %v803_v5  ;;  %v825_v37 = vmul.u32 18, %v824_v6  ;;  %v2797_v0 = vsub.s32 %v2579_v45, %v1001_v3 }
  0x69   : > { %v1023_v40 = vmul.u32 18, %v1022_v47  ;;  %vm3803_vm11 = vcmp.ne.s32.totalorder %v2724_v39, 0  ;;  %vm3804_vm7 = vcmp.lt.s32.totalorder %v2724_v39, 0  ;;  %v2810_v54 = vsub.s32 %v2590_v46, %v836_v11 }
  0x6a   : > { %vm2803_vm12 = vmand %vm3804_vm7, %vm3803_vm11  ;;  %v858_v5 = vmul.u32 18, %v857_v8  ;;  %vm3808_vm3 = vcmp.ne.s32.totalorder %v2758_v48, 0  ;;  %vm3809_vm1 = vcmp.lt.s32.totalorder %v2758_v48, 0  ;;  %v3810_v45 = vmov 0 }
  0x6b   : > { %3807 = vst [vmem:[#allocation40_spill] sm:$0xff] %v2810_v54  ;;  %vm2816_vm10 = vmand %vm3809_vm1, %vm3808_vm3  ;;  %vm1127_vm7 = vcmp.lt.s32.totalorder %v2776_v44, 0  ;;  %v2822_v19 = vsub.s32 %v2593_v17, %v1034_v12  ;;  %v1056_v25 = vmul.u32 18, %v1055_v35  ;;  %v846_v42 = vshrl.u32 %v2763_v53, 4 }
  0x6c   : > { %v3811_v45 = vsel %vm2816_vm10, 4294967295, %v3810_v45  ;;  %vm3813_vm11 = vcmp.ne.s32.totalorder %v2769_v49, 0  ;;  %vm3814_vm13 = vcmp.lt.s32.totalorder %v2769_v49, 0  ;;  %v3815_v46 = vmov 0 }
  0x6d   : > { %3812 = vst [vmem:[#allocation41_spill] sm:$0xff] %v2822_v19  ;;  %vm2829_vm4 = vmand %vm3814_vm13, %vm3813_vm11  ;;  %v2834_v11 = vadd.s32 18, %v2769_v49  ;;  %vm1108_vm1 = vcmp.lt.s32.totalorder %v2792_v61, 0  ;;  %v2839_v17 = vsub.s32 %v2604_v41, %v825_v37  ;;  %vm3818_vm14 = vcmp.ne.s32.totalorder %v2773_v43, 0 }
  0x6e   : > { %v3816_v46 = vsel %vm2829_vm4, 4294967295, %v3815_v46  ;;  %vm3819_vm5 = vcmp.lt.s32.totalorder %v2773_v43, 0  ;;  %v3820_v10 = vmov 0  ;;  %v2850_v50 = vadd.s32 18, %v2773_v43 }
  0x6f   : > { %3817 = vst [vmem:[#allocation42_spill] sm:$0xff] %v2839_v17  ;;  %vm2845_vm8 = vmand %vm3819_vm5, %vm3818_vm14  ;;  %v2855_v24 = vsub.s32 %v2638_v14, %v1023_v40  ;;  %vm3822_vm3 = vcmp.ne.s32.totalorder %v2776_v44, 0  ;;  %v3823_v41 = vmov 0  ;;  %v2866_v52 = vsub.s32 %v2659_v38, %v858_v5  ;;  %v3874_v5 = vld [vmem:[#allocation2_spill] sm:$0xff] }
  0x70   : > { %v3821_v10 = vsel %vm2845_vm8, 4294967295, %v3820_v10  ;;  %vm2859_vm15 = vmand %vm1127_vm7, %vm3822_vm3  ;;  %v1044_v53 = vshrl.u32 %v2782_v62, 4  ;;  %v3826_v14 = vsel %vm2160_vm6, %v2155_v15, %v2135_v4  ;;  %v3827_v6 = vmov 0 }
  0x71   : > { %v3824_v41 = vsel %vm2859_vm15, 4294967295, %v3823_v41  ;;  %3825 = vst [vmem:[#allocation43_spill] sm:$0xff] %v2866_v52  ;;  %vm2874_vm11 = vcmp.lt.s32.totalorder %v3826_v14, 16  ;;  %v3829_v3 = vsel %vm2187_vm9, %v2172_v22, %v2141_v9  ;;  %v3830_v47 = vmov 0 }
  0x72   : > { %v3828_v6 = vsel %vm2874_vm11, 4294967295, %v3827_v6  ;;  %vm2883_vm7 = vcmp.lt.s32.totalorder %v3829_v3, 16  ;;  %vm3832_vm3 = vcmp.ne.s32.totalorder %v2792_v61, 0  ;;  %v2896_v4 = vsub.s32 %v2667_v21, %v1056_v25 }
  0x73   : > { %v3831_v47 = vsel %vm2883_vm7, 4294967295, %v3830_v47  ;;  %vm2889_vm14 = vmand %vm1108_vm1, %vm3832_vm3  ;;  %v847_v15 = vmul.u32 18, %v846_v42  ;;  %vm3836_vm9 = vnez %v3719_v51  ;;  %v3838_v22 = vmov 0 }
  0x74   : > { %v3834_v18 = vsel %vm2889_vm14, 4294967295, %v3833_v18  ;;  %3835 = vst [vmem:[#allocation44_spill] sm:$0xff] %v2896_v4  ;;  %v3837_v9 = vsel %vm3836_vm9, %v2196_v29, %v2158_v16  ;;  %vm3840_vm1 = vnez %v3721_v55  ;;  %v3842_v62 = vmov 0 }
  0x75   : > { %vm2903_vm13 = vcmp.lt.s32.totalorder %v3837_v9, 16  ;;  %v3841_v27 = vsel %vm3840_vm1, %v2213_v36, %v2169_v20  ;;  %v2917_v21 = vadd.s32 18, %v2776_v44  ;;  %v2920_v51 = vadd.s32 18, %v2792_v61  ;;  %v3034_v9 = vld [vmem:[%s3622_s2] ss:$0 sm:$0xff] }
  0x76   : > { %v3839_v22 = vsel %vm2903_vm13, 4294967295, %v3838_v22  ;;  %vm2912_vm3 = vcmp.lt.s32.totalorder %v3841_v27, 16  ;;  %vm3844_vm9 = vcmp.ne.s32.totalorder %v2797_v0, 0  ;;  %vm3845_vm5 = vcmp.lt.s32.totalorder %v2797_v0, 0 }
  0x77   : > { %v3843_v62 = vsel %vm2912_vm3, 4294967295, %v3842_v62  ;;  %vm2926_vm6 = vmand %vm3845_vm5, %vm3844_vm9  ;;  %v3846_v16 = vmov 0  ;;  %vm1074_vm1 = vcmp.ne.s32.totalorder %v2839_v17, 0  ;;  %vm1110_vm13 = vcmp.lt.s32.totalorder %v2839_v17, 0 }
  0x78   : > { %v3847_v16 = vsel %vm2926_vm6, 4294967295, %v3846_v16  ;;  %v2933_v20 = vadd.s32 18, %v2797_v0  ;;  %vm3848_vm3 = vcmp.ne.s32.totalorder %v2810_v54, 0  ;;  %vm3849_vm7 = vcmp.lt.s32.totalorder %v2810_v54, 0 }
  0x79   : > { %vm2939_vm11 = vmand %vm3849_vm7, %vm3848_vm3  ;;  %v3850_v29 = vmov 0  ;;  %v2944_v36 = vadd.s32 18, %v2810_v54  ;;  %vm3854_vm2 = vcmp.ne.s32.totalorder %v2822_v19, 0  ;;  %vm3855_vm0 = vcmp.lt.s32.totalorder %v2822_v19, 0  ;;  %v3904_v54 = vld [vmem:[#allocation9_spill] sm:$0xff] }
  0x7a   : > { %v3851_v29 = vsel %vm2939_vm11, 4294967295, %v3850_v29  ;;  %vm2952_vm6 = vmand %vm3855_vm0, %vm3854_vm2  ;;  %v3856_v55 = vmov 0  ;;  %v2957_v38 = vadd.s32 18, %v2822_v19  ;;  %v1045_v8 = vmul.u32 18, %v1044_v53  ;;  %v3880_v53 = vld [vmem:[#allocation4_spill] sm:$0xff] }
  0x7b   : > { %3852 = vst [vmem:[#allocation45_spill] sm:$0xff] %v3851_v29  ;;  %3853 = vst [vmem:[#allocation46_spill] sm:$0xff] %v2944_v36  ;;  %v3857_v55 = vsel %vm2952_vm6, 4294967295, %v3856_v55  ;;  %vm3860_vm5 = vnez %v3725_v1  ;;  %v3864_v37 = vmov 0  ;;  %v2975_v40 = vadd.s32 18, %v2839_v17  ;;  %v3911_v17 = vld [vmem:[#allocation13_spill] sm:$0xff] }
  0x7c   : > { %3858 = vst [vmem:[#allocation47_spill] sm:$0xff] %v3857_v55  ;;  %3859 = vst [vmem:[#allocation48_spill] sm:$0xff] %v2957_v38  ;;  %v3861_v12 = vsel %vm3860_vm5, %v2289_v60, %v2193_v28  ;;  %v2980_v1 = vsub.s32 %v2735_v23, %v847_v15  ;;  %vm3869_vm5 = vnez %v3727_v7  ;;  %v3876_v42 = vmov 0  ;;  %v3878_v23 = vld [vmem:[#allocation5_spill] sm:$0xff]  ;;  %v3881_v7 = vld [vmem:[#allocation3_spill] sm:$0xff] }
  0x7d   : > { %vm2966_vm9 = vcmp.lt.s32.totalorder %v3861_v12, 16  ;;  %vm2970_vm0 = vmand %vm1110_vm13, %vm1074_vm1  ;;  %3867 = vst [vmem:[#allocation50_spill] sm:$0xff] %v2975_v40  ;;  %v3870_v28 = vsel %vm3869_vm5, %v2311_v2, %v2205_v33  ;;  %vm3873_vm13 = vnez %v3729_v34  ;;  %vm3879_vm3 = vnez %v3878_v23  ;;  %v3902_v2 = vld [vmem:[#allocation11_spill] sm:$0xff]  ;;  %v3905_v55 = vld [vmem:[#allocation6_spill] sm:$0xff] }
  0x7e   : > { %v3865_v37 = vsel %vm2970_vm0, 4294967295, %v3864_v37  ;;  %3868 = vst [vmem:[#allocation51_spill] sm:$0xff] %v2980_v1  ;;  %vm2987_vm7 = vcmp.lt.s32.totalorder %v3870_v28, 16  ;;  %v3875_v25 = vsel %vm3873_vm13, %v2351_v30, %v3874_v5  ;;  %v3882_v14 = vsel %vm3879_vm3, %v3880_v53, %v3881_v7  ;;  %v3909_v7 = vld [vmem:[#allocation17_spill] sm:$0xff]  ;;  %v3912_v40 = vld [vmem:[#allocation7_spill] sm:$0xff]  ;;  %v3918_v38 = vld [vmem:[#allocation20_spill] sm:$0xff] }
  0x7f   : > { %3866 = vst [vmem:[#allocation49_spill] sm:$0xff] %v3865_v37  ;;  %vm2996_vm1 = vcmp.lt.s32.totalorder %v3875_v25, 16  ;;  %vm3005_vm2 = vcmp.lt.s32.totalorder %v3882_v14, 16  ;;  %vm3885_vm5 = vcmp.ne.s32.totalorder %v2855_v24, 0  ;;  %vm3886_vm13 = vcmp.lt.s32.totalorder %v2855_v24, 0  ;;  %v3978_v60 = vld [vmem:[#allocation32_spill] sm:$0xff] }
  0x80   : > { %v3877_v42 = vsel %vm2996_vm1, 4294967295, %v3876_v42  ;;  %vm3021_vm1 = vmand %vm3886_vm13, %vm3885_vm5  ;;  %v3887_v34 = vmov 0  ;;  %v3026_v3 = vadd.s32 18, %v2855_v24  ;;  %v3029_v15 = vadd.s32 18, %v2866_v52 }
  0x81   : > { %v3888_v34 = vsel %vm3021_vm1, 4294967295, %v3887_v34  ;;  %vm3890_vm3 = vcmp.ne.s32.totalorder %v2866_v52, 0  ;;  %vm3891_vm5 = vcmp.lt.s32.totalorder %v2866_v52, 0  ;;  %v3892_v5 = vmov 0  ;;  %v3956_v52 = vld [vmem:[#allocation15_spill] sm:$0xff] }
  0x82   : > { %3889 = vst [vmem:[#allocation2_spill] sm:$0xff] %v3029_v15  ;;  %vm3052_vm13 = vmand %vm3891_vm5, %vm3890_vm3  ;;  %v3057_v25 = vadd.s32 18, %v2896_v4  ;;  %vm3897_vm3 = vcmp.ne.s32.totalorder %v2896_v4, 0  ;;  %vm3898_vm5 = vcmp.lt.s32.totalorder %v2896_v4, 0  ;;  %v3899_v14 = vmov 0 }
  0x83   : > { %v3893_v5 = vsel %vm3052_vm13, 4294967295, %v3892_v5  ;;  %vm3075_vm8 = vmand %vm3898_vm5, %vm3897_vm3  ;;  %v3080_v23 = vsub.s32 %v2755_v58, %v1045_v8  ;;  %vm3903_vm11 = vnez %v3902_v2  ;;  %vm3910_vm0 = vnez %v3909_v7  ;;  %v3919_v2 = vld [vmem:[#allocation8_spill] sm:$0xff]  ;;  %v3926_v7 = vld [vmem:[#allocation10_spill] sm:$0xff] }
  0x84   : > { %3894 = vst [vmem:[#allocation5_spill] sm:$0xff] %v3893_v5  ;;  %3895 = vst [vmem:[#allocation4_spill] sm:$0xff] %v3057_v25  ;;  %v3900_v14 = vsel %vm3075_vm8, 4294967295, %v3899_v14  ;;  %v3906_v53 = vsel %vm3903_vm11, %v3904_v54, %v3905_v55  ;;  %v3913_v37 = vsel %vm3910_vm0, %v3911_v17, %v3912_v40  ;;  %v3923_v55 = vld [vmem:[#allocation22_spill] sm:$0xff]  ;;  %vm3930_vm0 = vnez %v3828_v6 }
  0x85   : > { %3901 = vst [vmem:[#allocation3_spill] sm:$0xff] %v3900_v14  ;;  %vm3099_vm6 = vcmp.lt.s32.totalorder %v3906_v53, 16  ;;  %vm3108_vm5 = vcmp.lt.s32.totalorder %v3913_v37, 16  ;;  %vm3924_vm11 = vnez %v3923_v55  ;;  %v3925_v53 = vld [vmem:[#allocation21_spill] sm:$0xff]  ;;  %vm3933_vm13 = vcmp.lt.s32.totalorder %v2980_v1, 0  ;;  %v3953_v14 = vld [vmem:[#allocation27_spill] sm:$0xff] }
  0x86   : > { %v3927_v29 = vsel %vm3924_vm11, %v3925_v53, %v3926_v7  ;;  %vm3932_vm11 = vcmp.ne.s32.totalorder %v2980_v1, 0  ;;  %vm3936_vm10 = vnez %v3839_v22  ;;  %v3941_v22 = vld [vmem:[#allocation23_spill] sm:$0xff] }
  0x87   : > { %vm3126_vm14 = vcmp.lt.s32.totalorder %v3927_v29, 16  ;;  %vm3155_vm1 = vmand %vm3933_vm13, %vm3932_vm11 }
  0xec   : > { %v1778_v28 = vpop.f32.mrb[0].mxu0  ;;  %v1805_v12 = vpop.f32.mrb[0].mxu1 }
  0xed   : > { %v454_v27 = vadd.f32 %v1778_v28, %v3034_v9  ;;  %v544_v58 = vadd.f32 %v1805_v12, %v3034_v9  ;;  %v448_v8 = vpop.f32.mrb[1].mxu0  ;;  %v538_v30 = vpop.f32.mrb[1].mxu1  ;;  %v3916_v12 = vld [vmem:[#allocation19_spill] sm:$0xff]  ;;  %v4011_v28 = vld [vmem:[#allocation38_spill] sm:$0xff] }
  0xee   : > { %vm3917_vm3 = vnez %v3916_v12  ;;  %v539_v40 = vadd.f32 %v3034_v9, %v538_v30  ;;  %v3145_v12 = vadd.s32 18, %v2980_v1  ;;  %v3934_v30 = vmov 0 }
  0xef   : > { %v3920_v36 = vsel %vm3917_vm3, %v3918_v38, %v3919_v2  ;;  %v449_v38 = vadd.f32 %v3034_v9, %v448_v8  ;;  %v1349_v2 = vsel %vm3930_vm0, %v454_v27, 0.0  ;;  %vm3931_vm3 = vnez %v3831_v47 }
  0xf0   : > { %vm3117_vm15 = vcmp.lt.s32.totalorder %v3920_v36, 16  ;;  %v1367_v55 = vsel %vm3931_vm3, %v544_v58, 0.0  ;;  %v3935_v30 = vsel %vm3155_vm1, 4294967295, %v3934_v30  ;;  %v1421_v8 = vrot.slane %v1349_v2, 5  ;;  %v1781_v27 = vpop.f32.mrb[2].mxu0  ;;  %v1808_v58 = vpop.f32.mrb[2].mxu1 }
  0xf1   : > { %v1457_v53 = vrot.slane %v1367_v55, 5  ;;  %v1348_v6 = vsel %vm3936_vm10, %v449_v38, 0.0  ;;  %vm3937_vm0 = vnez %v3843_v62  ;;  %v464_v36 = vadd.f32 %v1781_v27, %v3034_v9  ;;  %v458_v4 = vpop.f32.mrb[3].mxu0  ;;  %v548_v2 = vpop.f32.mrb[3].mxu1  ;;  %v3939_v55 = vld [vmem:[#allocation24_spill] sm:$0xff] }
  0xf2   : > { %v1366_v47 = vsel %vm3937_vm0, %v539_v40, 0.0  ;;  %v1420_v7 = vrot.slane %v1348_v6, 5  ;;  %v554_v37 = vadd.f32 %v1808_v58, %v3034_v9  ;;  %vm3940_vm13 = vnez %v3939_v55  ;;  %v3942_v38 = vld [vmem:[#allocation12_spill] sm:$0xff]  ;;  %v3946_v40 = vld [vmem:[#allocation25_spill] sm:$0xff]  ;;  %v3948_v6 = vld [vmem:[#allocation26_spill] sm:$0xff] }
  0xf3   : > { %v3165_v29 = vrot.slane %v1366_v47, 5  ;;  %v3943_v25 = vsel %vm3940_vm13, %v3941_v22, %v3942_v38  ;;  %v3944_v62 = vmov 0  ;;  %vm3947_vm3 = vnez %v3946_v40  ;;  %v3949_v47 = vld [vmem:[#allocation14_spill] sm:$0xff]  ;;  %v3955_v55 = vld [vmem:[#allocation28_spill] sm:$0xff] }
  0xf4   : > { %vm3174_vm10 = vcmp.lt.s32.totalorder %v3943_v25, 16  ;;  %v3950_v27 = vsel %vm3947_vm3, %v3948_v6, %v3949_v47  ;;  %v3951_v58 = vmov 0  ;;  %vm3954_vm0 = vnez %v3953_v14  ;;  %v3960_v25 = vld [vmem:[#allocation29_spill] sm:$0xff]  ;;  %v3962_v38 = vld [vmem:[#allocation30_spill] sm:$0xff]  ;;  %v3963_v40 = vld [vmem:[#allocation16_spill] sm:$0xff] }
  0xf5   : > { %3938 = vst [vmem:[#allocation11_spill] sm:$0xff] %v3165_v29  ;;  %v3945_v62 = vsel %vm3174_vm10, 4294967295, %v3944_v62  ;;  %vm3183_vm11 = vcmp.lt.s32.totalorder %v3950_v27, 16  ;;  %v3957_v15 = vsel %vm3954_vm0, %v3955_v55, %v3956_v52  ;;  %v3958_v22 = vmov 0 }
  0xf6   : > { %v3952_v58 = vsel %vm3183_vm11, 4294967295, %v3951_v58  ;;  %vm3192_vm13 = vcmp.lt.s32.totalorder %v3957_v15, 16  ;;  %vm3961_vm8 = vnez %v3960_v25  ;;  %v3965_v6 = vmov 0 }
  0xf7   : > { %v3959_v22 = vsel %vm3192_vm13, 4294967295, %v3958_v22  ;;  %v3964_v5 = vsel %vm3961_vm8, %v3962_v38, %v3963_v40  ;;  %v459_v47 = vadd.f32 %v3034_v9, %v458_v4  ;;  %v549_v14 = vadd.f32 %v3034_v9, %v548_v2  ;;  %v1784_v38 = vpop.f32.mrb[4].mxu0  ;;  %v1811_v40 = vpop.f32.mrb[4].mxu1 }
  0xf8   : > { %vm3201_vm4 = vcmp.lt.s32.totalorder %v3964_v5, 16  ;;  %v3212_v15 = vadd.s32 18, %v3080_v23  ;;  %vm3967_vm3 = vcmask 1042432   ;;  %v1351_v4 = vsel %vm2966_vm9, %v464_v36, 0.0 }
  0xf9   : > { %v3966_v6 = vsel %vm3201_vm4, 4294967295, %v3965_v6  ;;  %v1422_v27 = vsel %vm3967_vm3, %v1420_v7, %v1421_v8  ;;  %vm3968_vm0 = vmmov %vm3967_vm3  ;;  %vm3970_vm4 = vcmp.ne.s32.totalorder %v3080_v23, 0  ;;  %vm3971_vm13 = vcmp.lt.s32.totalorder %v3080_v23, 0 }
  0xfa   : > { %v1528_v55 = vsel %vm3968_vm0, 0.0, %v1420_v7  ;;  %vm3969_vm8 = vmmov %vm3968_vm0  ;;  %vm3974_vm1 = vcmask 130048   ;;  %v1425_v7 = vrot.slane %v1351_v4, 5  ;;  %v1369_v25 = vsel %vm2987_vm7, %v554_v37, 0.0  ;;  %v3980_v37 = vld [vmem:[#allocation31_spill] sm:$0xff] }
  0xfb   : > { %v1458_v5 = vsel %vm3969_vm8, %v3165_v29, %v1457_v53  ;;  %vm3224_vm11 = vmand %vm3971_vm13, %vm3970_vm4  ;;  %1534 = vst.msk [vmem:[%s2239_s30 + $0x10] sm:$0xff] %vm3974_vm1, %v1528_v55  ;;  %vm3977_vm9 = vnez %v3877_v42  ;;  %v1368_v36 = vsel %vm3005_vm2, %v549_v14, 0.0  ;;  %v1461_v52 = vrot.slane %v1369_v25, 5  ;;  %v468_v55 = vpop.f32.mrb[5].mxu0  ;;  %v3981_v42 = vld [vmem:[#allocation18_spill] sm:$0xff]  ;;  %v3985_v14 = vld [vmem:[#allocation37_spill] sm:$0xff] }
  0xfc   : > { %vm3975_vm10 = vmmov %vm3974_vm1  ;;  %v1350_v35 = vsel %vm3977_vm9, %v459_v47, 0.0  ;;  %v1459_v1 = vrot.slane %v1368_v36, 5  ;;  %vm3979_vm4 = vnez %v3978_v60  ;;  %vm3986_vm2 = vnez %v3985_v14  ;;  %v3987_v4 = vld [vmem:[#allocation35_spill] sm:$0xff]  ;;  %v3988_v25 = vld [vmem:[#allocation33_spill] sm:$0xff] }
  0xfd   : > { %1535 = vst.msk [vmem:[%s2239_s30 + $0x18] sm:$0xff] %vm3975_vm10, %v1422_v27  ;;  %vm3976_vm3 = vmmov %vm3974_vm1  ;;  %v1423_v29 = vrot.slane %v1350_v35, 5  ;;  %v474_v27 = vadd.f32 %v1784_v38, %v3034_v9  ;;  %v3982_v47 = vsel %vm3979_vm4, %v3980_v37, %v3981_v42  ;;  %v3989_v35 = vsel %vm3986_vm2, %v3987_v4, %v3988_v25  ;;  %v3997_v37 = vld [vmem:[#allocation34_spill] sm:$0xff] }
  0xfe   : > { %1553 = vst.msk [vmem:[%s2239_s30 + $0xa8] sm:$0xff] %vm3976_vm3, %v1458_v5  ;;  %v558_v5 = vpop.f32.mrb[5].mxu1  ;;  %vm3246_vm7 = vcmp.lt.s32.totalorder %v3982_v47, 16  ;;  %vm3255_vm1 = vcmp.lt.s32.totalorder %v3989_v35, 16  ;;  %vm3992_vm10 = vnez %v3793_v26  ;;  %v3994_v60 = vmov 0  ;;  %v4065_v36 = vld [vmem:[#allocation46_spill] sm:$0xff] }
  0xff   : > { %v3993_v38 = vsel %vm3992_vm10, %v2643_v57, %v2607_v63  ;;  %vm3996_vm0 = vnez %v3798_v32  ;;  %v3999_v47 = vmov 0  ;;  %v564_v14 = vadd.f32 %v1811_v40, %v3034_v9 }
 0x100   : > { %vm3264_vm13 = vcmp.lt.s32.totalorder %v3993_v38, 16  ;;  %v3998_v42 = vsel %vm3996_vm0, %v2648_v59, %v3997_v37  ;;  %v469_v26 = vadd.f32 %v3034_v9, %v468_v55  ;;  %v559_v4 = vadd.f32 %v3034_v9, %v558_v5  ;;  %v1814_v55 = vpop.f32.mrb[6].mxu1 }
 0x101   : > { %v3995_v60 = vsel %vm3264_vm13, 4294967295, %v3994_v60  ;;  %vm3273_vm8 = vcmp.lt.s32.totalorder %v3998_v42, 16  ;;  %v1238_v63 = vsel %vm3224_vm11, %v3212_v15, %v3080_v23  ;;  %vm4001_vm3 = vcmask 1042432   ;;  %v568_v19 = vpop.f32.mrb[7].mxu1 }
 0x102   : > { %v4000_v47 = vsel %vm3273_vm8, 4294967295, %v3999_v47  ;;  %v1424_v57 = vsel %vm4001_vm3, %v1421_v8, %v1423_v29  ;;  %vm4002_vm9 = vmmov %vm4001_vm3  ;;  %vm4005_vm10 = vcmask 130048   ;;  %v1353_v40 = vsel %vm3099_vm6, %v474_v27, 0.0  ;;  %v4009_v27 = vld [vmem:[#allocation39_spill] sm:$0xff] }
 0x103   : > { %v1426_v32 = vsel %vm4002_vm9, %v1423_v29, %v1425_v7  ;;  %vm4003_vm4 = vmmov %vm4001_vm3  ;;  %1536 = vst.msk [vmem:[%s2239_s30 + $0x20] sm:$0xff] %vm4005_vm10, %v1424_v57  ;;  %v1371_v8 = vsel %vm3108_vm5, %v564_v14, 0.0  ;;  %v1352_v29 = vsel %vm3117_vm15, %v469_v26, 0.0  ;;  %v1429_v5 = vrot.slane %v1353_v40, 5  ;;  %v4012_v14 = vld [vmem:[#allocation36_spill] sm:$0xff] }
 0x104   : > { %v1460_v59 = vsel %vm4003_vm4, %v1457_v53, %v1459_v1  ;;  %vm4004_vm2 = vmmov %vm4001_vm3  ;;  %v1787_v53 = vpop.f32.mrb[6].mxu0  ;;  %v1465_v35 = vrot.slane %v1371_v8, 5  ;;  %v1427_v38 = vrot.slane %v1352_v29, 5  ;;  %vm4010_vm6 = vnez %v4009_v27  ;;  %v1817_v29 = vpop.f32.mrb[8].mxu1 }
 0x105   : > { %v1462_v25 = vsel %vm4004_vm2, %v1459_v1, %v1461_v52  ;;  %vm4006_vm0 = vmmov %vm4005_vm10  ;;  %v1370_v1 = vsel %vm3126_vm14, %v559_v4, 0.0  ;;  %v478_v42 = vpop.f32.mrb[7].mxu0  ;;  %v4013_v54 = vsel %vm4010_vm6, %v4011_v28, %v4012_v14  ;;  %v4016_v26 = vsel %vm2803_vm12, %v2766_v31, %v2724_v39  ;;  %v4098_v4 = vld [vmem:[#allocation2_spill] sm:$0xff] }
 0x106   : > { %1537 = vst.msk [vmem:[%s2239_s30 + $0x28] sm:$0xff] %vm4006_vm0, %v1426_v32  ;;  %vm4007_vm8 = vmmov %vm4006_vm0  ;;  %v1463_v37 = vrot.slane %v1370_v1, 5  ;;  %vm3309_vm15 = vcmp.lt.s32.totalorder %v4013_v54, 16  ;;  %vm3318_vm14 = vcmp.lt.s32.totalorder %v4016_v26, 16  ;;  %vm4019_vm5 = vnez %v3811_v45  ;;  %v1790_v8 = vpop.f32.mrb[8].mxu0 }
 0x107   : > { %1554 = vst.msk [vmem:[%s2239_s30 + $0xb0] sm:$0xff] %vm4007_vm8, %v1460_v59  ;;  %vm4008_vm13 = vmmov %vm4006_vm0  ;;  %v4020_v57 = vsel %vm4019_vm5, %v2788_v13, %v2758_v48  ;;  %vm4023_vm8 = vnez %v3816_v46  ;;  %v484_v31 = vadd.f32 %v1787_v53, %v3034_v9  ;;  %v574_v45 = vadd.f32 %v1814_v55, %v3034_v9 }
 0x108   : > { %1555 = vst.msk [vmem:[%s2239_s30 + $0xb8] sm:$0xff] %vm4008_vm13, %v1462_v25  ;;  %vm3327_vm13 = vcmp.lt.s32.totalorder %v4020_v57, 16  ;;  %v4024_v56 = vsel %vm4023_vm8, %v2834_v11, %v2769_v49  ;;  %v479_v59 = vadd.f32 %v3034_v9, %v478_v42  ;;  %v569_v48 = vadd.f32 %v3034_v9, %v568_v19  ;;  %vm4027_vm12 = vmmov %vm4004_vm2 }
 0x109   : > { %vm3336_vm3 = vcmp.lt.s32.totalorder %v4024_v56, 16  ;;  %v1428_v13 = vsel %vm4027_vm12, %v1425_v7, %v1427_v38  ;;  %vm4028_vm9 = vmmov %vm4004_vm2  ;;  %v1466_v49 = vsel %vm4004_vm2, %v1463_v37, %v1465_v35  ;;  %vm4033_vm8 = vnez %v3945_v62  ;;  %v578_v62 = vpop.f32.mrb[9].mxu1 }
 0x10a   : > { %v1430_v25 = vsel %vm4028_vm9, %v1427_v38, %v1429_v5  ;;  %vm4029_vm4 = vmmov %vm4004_vm2  ;;  %v1355_v11 = vsel %vm4033_vm8, %v484_v31, 0.0  ;;  %vm4034_vm11 = vnez %v3952_v58  ;;  %vm4035_vm12 = vnez %v3959_v22  ;;  %v1820_v14 = vpop.f32.mrb[10].mxu1 }
 0x10b   : > { %v1464_v46 = vsel %vm4029_vm4, %v1461_v52, %v1463_v37  ;;  %vm4030_vm10 = vmmov %vm4006_vm0  ;;  %1539 = vst.msk [vmem:[%s2239_s30 + $0x38] sm:$0xff] %vm4006_vm0, %v1430_v25  ;;  %v1373_v7 = vsel %vm4034_vm11, %v574_v45, 0.0  ;;  %v1354_v40 = vsel %vm4035_vm12, %v479_v59, 0.0  ;;  %vm4036_vm9 = vnez %v3966_v6  ;;  %v488_v37 = vpop.f32.mrb[9].mxu0  ;;  %v588_v33 = vpop.f32.mrb[11].mxu1  ;;  %v4063_v45 = vld [vmem:[#allocation45_spill] sm:$0xff] }
 0x10c   : > { %1538 = vst.msk [vmem:[%s2239_s30 + $0x30] sm:$0xff] %vm4030_vm10, %v1428_v13  ;;  %vm4031_vm6 = vmmov %vm4006_vm0  ;;  %v1372_v52 = vsel %vm4036_vm9, %v569_v48, 0.0  ;;  %v1433_v1 = vrot.slane %v1355_v11, 5  ;;  %v1469_v53 = vrot.slane %v1373_v7, 5  ;;  %v1431_v55 = vrot.slane %v1354_v40, 5  ;;  %v1793_v28 = vpop.f32.mrb[10].mxu0 }
 0x10d   : > { %1556 = vst.msk [vmem:[%s2239_s30 + $0xc0] sm:$0xff] %vm4031_vm6, %v1464_v46  ;;  %vm4032_vm5 = vmmov %vm4006_vm0  ;;  %v1467_v38 = vrot.slane %v1372_v52, 5  ;;  %vm4037_vm4 = vnez %v3821_v10  ;;  %vm4041_vm2 = vnez %v3824_v41  ;;  %vm4045_vm0 = vnez %v3834_v18  ;;  %v498_v31 = vpop.f32.mrb[11].mxu0  ;;  %v4066_v59 = vld [vmem:[#allocation40_spill] sm:$0xff]  ;;  %v4070_v48 = vld [vmem:[#allocation47_spill] sm:$0xff] }
 0x10e   : > { %1557 = vst.msk [vmem:[%s2239_s30 + $0xc8] sm:$0xff] %vm4032_vm5, %v1466_v49  ;;  %v4038_v58 = vsel %vm4037_vm4, %v2850_v50, %v2773_v43  ;;  %v4042_v6 = vsel %vm4041_vm2, %v2917_v21, %v2776_v44  ;;  %v4046_v10 = vsel %vm4045_vm0, %v2920_v51, %v2792_v61  ;;  %v4047_v43 = vmov 0  ;;  %v4072_v13 = vld [vmem:[#allocation48_spill] sm:$0xff]  ;;  %v4073_v25 = vld [vmem:[#allocation41_spill] sm:$0xff]  ;;  %v4079_v7 = vld [vmem:[#allocation50_spill] sm:$0xff] }
 0x10f   : > { %vm3369_vm11 = vcmp.lt.s32.totalorder %v4038_v58, 16  ;;  %vm3378_vm10 = vcmp.lt.s32.totalorder %v4042_v6, 16  ;;  %vm3387_vm6 = vcmp.lt.s32.totalorder %v4046_v10, 16  ;;  %vm4049_vm5 = vnez %v3847_v16  ;;  %v4077_v11 = vld [vmem:[#allocation49_spill] sm:$0xff]  ;;  %v4080_v40 = vld [vmem:[#allocation42_spill] sm:$0xff] }
 0x110   : > { %v4048_v43 = vsel %vm3387_vm6, 4294967295, %v4047_v43  ;;  %v4050_v50 = vsel %vm4049_vm5, %v2933_v20, %v2797_v0  ;;  %v4051_v44 = vmov 0  ;;  %v494_v41 = vadd.f32 %v1790_v8, %v3034_v9 }
 0x111   : > { %vm3396_vm8 = vcmp.lt.s32.totalorder %v4050_v50, 16  ;;  %v584_v18 = vadd.f32 %v1817_v29, %v3034_v9  ;;  %v489_v21 = vadd.f32 %v3034_v9, %v488_v37  ;;  %v579_v61 = vadd.f32 %v3034_v9, %v578_v62 }
 0x112   : > { %v4052_v44 = vsel %vm3396_vm8, 4294967295, %v4051_v44  ;;  %vm4053_vm12 = vcmask 1042432   ;;  %vm4057_vm0 = vcmask 130048   ;;  %v1357_v20 = vsel %vm3246_vm7, %v494_v41, 0.0  ;;  %v1796_v41 = vpop.f32.mrb[12].mxu0 }
 0x113   : > { %v1432_v51 = vsel %vm4053_vm12, %v1429_v5, %v1431_v55  ;;  %vm4054_vm9 = vmmov %vm4053_vm12  ;;  %v1375_v5 = vsel %vm3255_vm1, %v584_v18, 0.0  ;;  %vm4061_vm12 = vnez %v3995_v60  ;;  %v1437_v54 = vrot.slane %v1357_v20, 5  ;;  %v1823_v18 = vpop.f32.mrb[12].mxu1  ;;  %v4099_v20 = vld [vmem:[#allocation43_spill] sm:$0xff] }
 0x114   : > { %v1434_v19 = vsel %vm4054_vm9, %v1431_v55, %v1433_v1  ;;  %vm4055_vm4 = vmmov %vm4054_vm9  ;;  %1540 = vst.msk [vmem:[%s2239_s30 + $0x40] sm:$0xff] %vm4057_vm0, %v1432_v51  ;;  %v1356_v27 = vsel %vm4061_vm12, %v489_v21, 0.0  ;;  %vm4062_vm9 = vnez %v4000_v47  ;;  %v1473_v26 = vrot.slane %v1375_v5, 5  ;;  %v598_v17 = vpop.f32.mrb[13].mxu1  ;;  %v4103_v5 = vld [vmem:[#allocation3_spill] sm:$0xff] }
 0x115   : > { %v1468_v16 = vsel %vm4055_vm4, %v1465_v35, %v1467_v38  ;;  %vm4056_vm2 = vmmov %vm4055_vm4  ;;  %v1374_v35 = vsel %vm4062_vm9, %v579_v61, 0.0  ;;  %v1435_v57 = vrot.slane %v1356_v27, 5  ;;  %vm4064_vm7 = vnez %v4063_v45  ;;  %v4105_v27 = vld [vmem:[#allocation4_spill] sm:$0xff] }
 0x116   : > { %v1470_v0 = vsel %vm4056_vm2, %v1467_v38, %v1469_v53  ;;  %vm4058_vm5 = vmmov %vm4057_vm0  ;;  %v1471_v56 = vrot.slane %v1374_v35, 5  ;;  %v4067_v60 = vsel %vm4064_vm7, %v4065_v36, %v4066_v59  ;;  %vm4078_vm4 = vnez %v4077_v11  ;;  %v4106_v35 = vld [vmem:[#allocation44_spill] sm:$0xff] }
 0x117   : > { %1541 = vst.msk [vmem:[%s2239_s30 + $0x48] sm:$0xff] %vm4058_vm5, %v1434_v19  ;;  %vm4059_vm8 = vmmov %vm4057_vm0  ;;  %vm3429_vm1 = vcmp.lt.s32.totalorder %v4067_v60, 16  ;;  %v4081_v52 = vsel %vm4078_vm4, %v4079_v7, %v4080_v40  ;;  %v4082_v8 = vmov 0  ;;  %v4086_v55 = vmov 0 }
 0x118   : > { %1558 = vst.msk [vmem:[%s2239_s30 + $0xd0] sm:$0xff] %vm4059_vm8, %v1468_v16  ;;  %vm4060_vm6 = vmmov %vm4057_vm0  ;;  %vm3447_vm2 = vcmp.lt.s32.totalorder %v4081_v52, 16  ;;  %vm4084_vm0 = vnez %v3888_v34  ;;  %v504_v38 = vadd.f32 %v1793_v28, %v3034_v9  ;;  %v594_v37 = vadd.f32 %v1820_v14, %v3034_v9  ;;  %v508_v16 = vpop.f32.mrb[13].mxu0 }
 0x119   : > { %1559 = vst.msk [vmem:[%s2239_s30 + $0xd8] sm:$0xff] %vm4060_vm6, %v1470_v0  ;;  %vm4071_vm6 = vnez %v4070_v48  ;;  %v4083_v8 = vsel %vm3447_vm2, 4294967295, %v4082_v8  ;;  %v4085_v29 = vsel %vm4084_vm0, %v3026_v3, %v2855_v24  ;;  %v499_v62 = vadd.f32 %v3034_v9, %v498_v31  ;;  %v4096_v0 = vld [vmem:[#allocation5_spill] sm:$0xff]  ;;  %v1799_v48 = vpop.f32.mrb[14].mxu0 }
 0x11a   : > { %v4074_v46 = vsel %vm4071_vm6, %v4072_v13, %v4073_v25  ;;  %vm3456_vm5 = vcmp.lt.s32.totalorder %v4085_v29, 16  ;;  %v589_v58 = vadd.f32 %v3034_v9, %v588_v33  ;;  %vm4088_vm12 = vcmask 1042432   ;;  %v1826_v13 = vpop.f32.mrb[14].mxu1  ;;  %v518_v7 = vpop.f32.mrb[15].mxu0 }
 0x11b   : > { %vm3438_vm8 = vcmp.lt.s32.totalorder %v4074_v46, 16  ;;  %v4087_v55 = vsel %vm3456_vm5, 4294967295, %v4086_v55  ;;  %v1436_v6 = vsel %vm4088_vm12, %v1433_v1, %v1435_v57  ;;  %vm4089_vm9 = vmmov %vm4088_vm12  ;;  %vm4092_vm4 = vcmask 130048   ;;  %v608_v42 = vpop.f32.mrb[15].mxu1 }
 0x11c   : > { %v1438_v10 = vsel %vm4089_vm9, %v1435_v57, %v1437_v54  ;;  %vm4090_vm7 = vmmov %vm4089_vm9  ;;  %1542 = vst.msk [vmem:[%s2239_s30 + $0x50] sm:$0xff] %vm4092_vm4, %v1436_v6  ;;  %v1359_v3 = vsel %vm3309_vm15, %v504_v38, 0.0  ;;  %v1377_v1 = vsel %vm3318_vm14, %v594_v37, 0.0  ;;  %v1358_v50 = vsel %vm3327_vm13, %v499_v62, 0.0  ;;  %v4111_v57 = vld [vmem:[#allocation51_spill] sm:$0xff] }
 0x11d   : > { %v1472_v34 = vsel %vm4090_vm7, %v1469_v53, %v1471_v56  ;;  %vm4091_vm6 = vmmov %vm4090_vm7  ;;  %v1376_v53 = vsel %vm3336_vm3, %v589_v58, 0.0  ;;  %v1441_v21 = vrot.slane %v1359_v3, 5  ;;  %v1477_v61 = vrot.slane %v1377_v1, 5  ;;  %v1829_v3 = vpop.f32.mrb[16].mxu1 }
 0x11e   : > { %v1474_v24 = vsel %vm4091_vm6, %v1471_v56, %v1473_v26  ;;  %vm4093_vm0 = vmmov %vm4092_vm4  ;;  %v1439_v51 = vrot.slane %v1358_v50, 5  ;;  %v1475_v19 = vrot.slane %v1376_v53, 5  ;;  %vm4097_vm15 = vnez %v4096_v0 }
 0x11f   : > { %1543 = vst.msk [vmem:[%s2239_s30 + $0x58] sm:$0xff] %vm4093_vm0, %v1438_v10  ;;  %vm4094_vm5 = vmmov %vm4093_vm0  ;;  %v4100_v32 = vsel %vm4097_vm15, %v4098_v4, %v4099_v20  ;;  %vm4104_vm13 = vnez %v4103_v5  ;;  %vm3516_vm9 = vcmp.lt.s32.totalorder %v1238_v63, 16  ;;  %v514_v45 = vadd.f32 %v1796_v41, %v3034_v9 }
 0x120   : > { %1560 = vst.msk [vmem:[%s2239_s30 + $0xe0] sm:$0xff] %vm4094_vm5, %v1472_v34  ;;  %vm4095_vm2 = vmmov %vm4093_vm0  ;;  %vm3489_vm14 = vcmp.lt.s32.totalorder %v4100_v32, 16  ;;  %v4107_v28 = vsel %vm4104_vm13, %v4105_v27, %v4106_v35  ;;  %v509_v36 = vadd.f32 %v3034_v9, %v508_v16  ;;  %v1442_v60 = vsel %vm4091_vm6, %v1439_v51, %v1441_v21  ;;  %v4141_v35 = vld [vmem:[#allocation11_spill] sm:$0xff] }
 0x121   : > { %1561 = vst.msk [vmem:[%s2239_s30 + $0xe8] sm:$0xff] %vm4095_vm2, %v1474_v24  ;;  %vm3498_vm3 = vcmp.lt.s32.totalorder %v4107_v28, 16  ;;  %vm4110_vm2 = vnez %v3935_v30  ;;  %v604_v30 = vadd.f32 %v1823_v18, %v3034_v9  ;;  %vm4118_vm7 = vmmov %vm4091_vm6  ;;  %vm4121_vm15 = vcmask 130048   ;;  %v1802_v24 = vpop.f32.mrb[16].mxu0  ;;  %v618_v18 = vpop.f32.mrb[17].mxu1 }
 0x122   : > { %v4112_v56 = vsel %vm4110_vm2, %v3145_v12, %v4111_v57  ;;  %v599_v12 = vadd.f32 %v3034_v9, %v598_v17  ;;  %v1440_v59 = vsel %vm4118_vm7, %v1437_v54, %v1439_v51  ;;  %vm4119_vm4 = vmmov %vm4091_vm6  ;;  %v1361_v15 = vsel %vm3369_vm11, %v514_v45, 0.0  ;;  %v528_v41 = vpop.f32.mrb[17].mxu0 }
 0x123   : > { %vm3507_vm5 = vcmp.lt.s32.totalorder %v4112_v56, 16  ;;  %v1476_v2 = vsel %vm4119_vm4, %v1473_v26, %v1475_v19  ;;  %vm4120_vm0 = vmmov %vm4119_vm4  ;;  %1544 = vst.msk [vmem:[%s2239_s30 + $0x60] sm:$0xff] %vm4121_vm15, %v1440_v59  ;;  %v1379_v63 = vsel %vm3378_vm10, %v604_v30, 0.0  ;;  %vm4125_vm7 = vnez %v4048_v43 }
 0x124   : > { %v1478_v23 = vsel %vm4120_vm0, %v1475_v19, %v1477_v61  ;;  %vm4122_vm13 = vmmov %vm4121_vm15  ;;  %v1360_v54 = vsel %vm4125_vm7, %v509_v36, 0.0  ;;  %vm4126_vm6 = vnez %v4052_v44  ;;  %vm1529_vm4 = vcmask 1040384  }
 0x125   : > { %1545 = vst.msk [vmem:[%s2239_s30 + $0x68] sm:$0xff] %vm4122_vm13, %v1442_v60  ;;  %vm4123_vm2 = vmmov %vm4122_vm13  ;;  %v1378_v26 = vsel %vm4126_vm6, %v599_v12, 0.0  ;;  %v1445_v25 = vrot.slane %v1361_v15, 5  ;;  %v1481_v46 = vrot.slane %v1379_v63, 5  ;;  %v1443_v22 = vrot.slane %v1360_v54, 5 }
 0x126   : > { %1562 = vst.msk [vmem:[%s2239_s30 + $0xf0] sm:$0xff] %vm4123_vm2, %v1476_v2  ;;  %vm4124_vm12 = vmmov %vm4123_vm2  ;;  %v1479_v11 = vrot.slane %v1378_v26, 5  ;;  %v524_v40 = vadd.f32 %v1799_v48, %v3034_v9  ;;  %v614_v43 = vadd.f32 %v1826_v13, %v3034_v9  ;;  %v519_v44 = vadd.f32 %v3034_v9, %v518_v7 }
 0x127   : > { %1563 = vst.msk [vmem:[%s2239_s30 + $0xf8] sm:$0xff] %vm4124_vm12, %v1478_v23  ;;  %v609_v52 = vadd.f32 %v3034_v9, %v608_v42  ;;  %vm4127_vm11 = vmmov %vm4120_vm0  ;;  %vm4133_vm6 = vnez %v4083_v8  ;;  %v534_v49 = vadd.f32 %v1802_v24, %v3034_v9  ;;  %v624_v8 = vadd.f32 %v1829_v3, %v3034_v9 }
 0x128   : > { %v1444_v29 = vsel %vm4127_vm11, %v1441_v21, %v1443_v22  ;;  %vm4128_vm10 = vmmov %vm4120_vm0  ;;  %v1480_v37 = vsel %vm4120_vm0, %v1477_v61, %v1479_v11  ;;  %v1363_v58 = vsel %vm3429_vm1, %v524_v40, 0.0  ;;  %v1381_v6 = vsel %vm3438_vm8, %v614_v43, 0.0 }
 0x129   : > { %v1446_v38 = vsel %vm4128_vm10, %v1443_v22, %v1445_v25  ;;  %vm4129_vm15 = vmmov %vm4120_vm0  ;;  %v1362_v10 = vsel %vm4133_vm6, %v519_v44, 0.0  ;;  %vm4134_vm11 = vnez %v4087_v55  ;;  %v1449_v1 = vrot.slane %v1363_v58, 5 }
 0x12a   : > { %v1482_v62 = vsel %vm4129_vm15, %v1479_v11, %v1481_v46  ;;  %vm4130_vm13 = vmmov %vm4123_vm2  ;;  %1547 = vst.msk [vmem:[%s2239_s30 + $0x78] sm:$0xff] %vm4123_vm2, %v1446_v38  ;;  %v1380_v34 = vsel %vm4134_vm11, %v609_v52, 0.0  ;;  %v1485_v50 = vrot.slane %v1381_v6, 5  ;;  %v1447_v53 = vrot.slane %v1362_v10, 5 }
 0x12b   : > { %1546 = vst.msk [vmem:[%s2239_s30 + $0x70] sm:$0xff] %vm4130_vm13, %v1444_v29  ;;  %vm4131_vm12 = vmmov %vm4123_vm2  ;;  %v1483_v47 = vrot.slane %v1380_v34, 5  ;;  %v529_v21 = vadd.f32 %v3034_v9, %v528_v41  ;;  %v619_v55 = vadd.f32 %v3034_v9, %v618_v18  ;;  %v1365_v9 = vsel %vm3489_vm14, %v534_v49, 0.0 }
 0x12c   : > { %1564 = vst.msk [vmem:[%s2239_s30 + $0x100] sm:$0xff] %vm4131_vm12, %v1480_v37  ;;  %vm4132_vm7 = vmmov %vm4123_vm2  ;;  %v1383_v17 = vsel %vm3498_vm3, %v624_v8, 0.0  ;;  %v1453_v20 = vrot.slane %v1365_v9, 5 }
 0x12d   : > { %1565 = vst.msk [vmem:[%s2239_s30 + $0x108] sm:$0xff] %vm4132_vm7, %v1482_v62  ;;  %vm4135_vm1 = vmmov %vm4120_vm0  ;;  %v1486_v16 = vsel %vm4120_vm0, %v1483_v47, %v1485_v50  ;;  %v1364_v0 = vsel %vm3507_vm5, %v529_v21, 0.0  ;;  %v1382_v4 = vsel %vm3516_vm9, %v619_v55, 0.0  ;;  %v1489_v32 = vrot.slane %v1383_v17, 5 }
 0x12e   : > { %v1448_v61 = vsel %vm4135_vm1, %v1445_v25, %v1447_v53  ;;  %vm4136_vm8 = vmmov %vm4120_vm0  ;;  %v1451_v5 = vrot.slane %v1364_v0, 5  ;;  %v1487_v27 = vrot.slane %v1382_v4, 5 }
 0x12f   : > { %v1450_v51 = vsel %vm4136_vm8, %v1447_v53, %v1449_v1  ;;  %vm4137_vm10 = vmmov %vm4120_vm0  ;;  %v1530_v28 = vsel %vm1529_vm4, %v1489_v32, 0.0 }
 0x130   : > { %v1484_v19 = vsel %vm4137_vm10, %v1481_v46, %v1483_v47  ;;  %vm4138_vm15 = vmmov %vm4123_vm2 }
 0x131   : > { %1548 = vst.msk [vmem:[%s2239_s30 + $0x80] sm:$0xff] %vm4138_vm15, %v1448_v61  ;;  %vm4139_vm13 = vmmov %vm4123_vm2 }
 0x132   : > { %1549 = vst.msk [vmem:[%s2239_s30 + $0x88] sm:$0xff] %vm4139_vm13, %v1450_v51  ;;  %vm4140_vm12 = vmmov %vm4123_vm2 }
 0x133   : > { %1566 = vst.msk [vmem:[%s2239_s30 + $0x110] sm:$0xff] %vm4123_vm2, %v1484_v19  ;;  %vm4142_vm7 = vmmov %vm4120_vm0 }
 0x134   : > { %1567 = vst.msk [vmem:[%s2239_s30 + $0x118] sm:$0xff] %vm4140_vm12, %v1486_v16  ;;  %v1456_v39 = vsel %vm4142_vm7, %v1453_v20, %v4141_v35  ;;  %vm4143_vm14 = vmmov %vm4120_vm0 }
 0x135   : > { %v1452_v14 = vsel %vm4143_vm14, %v1449_v1, %v1451_v5  ;;  %vm4144_vm3 = vmmov %vm4120_vm0 }
 0x136   : > { %v1454_v57 = vsel %vm4144_vm3, %v1451_v5, %v1453_v20  ;;  %vm4145_vm6 = vmmov %vm4123_vm2 }
 0x137   : > { %1552 = vst.msk [vmem:[%s2239_s30 + $0xa0] sm:$0xff] %vm4145_vm6, %v1456_v39  ;;  %vm4146_vm5 = vmmov %vm4123_vm2 }
 0x138   : > { %1570 = vst.msk [vmem:[%s2239_s30 + $0x130] sm:$0xff] %vm4146_vm5, %v1530_v28  ;;  %vm4147_vm11 = vmmov %vm4123_vm2 }
 0x139   : > { %1550 = vst.msk [vmem:[%s2239_s30 + $0x90] sm:$0xff] %vm4147_vm11, %v1452_v14  ;;  %vm4148_vm9 = vmmov %vm4123_vm2 }
 0x13a   : > { %1551 = vst.msk [vmem:[%s2239_s30 + $0x98] sm:$0xff] %vm4148_vm9, %v1454_v57  ;;  %vm4149_vm1 = vmmov %vm4120_vm0 }
 0x13b   : > { %v1488_v56 = vsel %vm4149_vm1, %v1485_v50, %v1487_v27  ;;  %vm4150_vm8 = vmmov %vm4120_vm0 }
 0x13c   : > { %v1490_v31 = vsel %vm4150_vm8, %v1487_v27, %v1489_v32  ;;  %vm4151_vm10 = vmmov %vm4123_vm2 }
 0x13d   : > { %1568 = vst.msk [vmem:[%s2239_s30 + $0x120] sm:$0xff] %vm4151_vm10, %v1488_v56  ;;  %vm4152_vm0 = vmmov %vm4123_vm2 }
 0x13e   : > { %1569 = vst.msk [vmem:[%s2239_s30 + $0x128] sm:$0xff] %vm4152_vm0, %v1490_v31 }
 0x13f PF: > { %s13_s14 = sadd.s32 1, %s1965_s14   ;;  %s4153_s12 = smov %s1961_s13 }
 0x140   : > { %p10_p5 = scmp.ge.s32.totalorder %s13_s14, 4   ;;  %s4154_s13 = smov %s4156_s15 }
 0x142   :  { %12 = sbr.rel (!%p10_p5) target bundleno = 2 (0x2), region = 68 }

</bundles_post_ra>
